<compile_context>
chip_gen: v7x
topology: tpu7x:2x2x1
jax: 0.10.0
libtpu: 0.0.40
codegen_flags: <defaults>
</compile_context>

<pallas_src>
import functools

import jax
import jax.numpy as jnp
from jax.experimental import pallas as pl
from jax.experimental.pallas import tpu as pltpu

# ----------------------------- config (small) ------------------------------
VOCAB = 64
HIDDEN = 32
INTERMEDIATE = 64
NUM_LAYERS = 2
NUM_HEADS = 4
NUM_KV_HEADS = 2
HEAD_DIM = HIDDEN // NUM_HEADS          # 8
ROPE_THETA = 10000.0
RMS_EPS = 1e-6
BATCH = 2
SEQ = 8

Q_WIDTH = NUM_HEADS * HEAD_DIM           # 32
KV_WIDTH = NUM_KV_HEADS * HEAD_DIM       # 16
QKV_WIDTH = Q_WIDTH + 2 * KV_WIDTH       # 64  (fused Wq|Wk|Wv)
GU_WIDTH = 2 * INTERMEDIATE              # 128 (fused Wg|Wu, lane-dense)


# ------------------------------ fused kernel ------------------------------
def _rms(x, w, eps):
    var = jnp.mean(x * x, axis=-1, keepdims=True)
    return x * jax.lax.rsqrt(var + eps) * w


def _model_kernel(
    x_ref, cosq_ref, sinq_ref, cosk_ref, sink_ref, rq_ref, rk_ref,
    in_norm_ref, post_norm_ref, wqkv_ref, wo_ref, wgu_ref, wd_ref, fnorm_ref,
    o_ref, h_scr, *, scale, eps,
):
    li = pl.program_id(1)
    num_layers = pl.num_programs(1)

    # Initialize the VMEM-resident residual stream with the embeddings for this
    # batch block (layer axis restarts at 0 for each new batch block).
    @pl.when(li == 0)
    def _():
        h_scr[...] = x_ref[...].astype(jnp.float32)

    h = h_scr[...]                                         # [S, H] f32

    # ---- input RMSNorm + fused QKV projection ----
    n1 = _rms(h, in_norm_ref[0], eps)                      # [S, H]
    qkv = jnp.dot(n1, wqkv_ref[0], preferred_element_type=jnp.float32)
    q = qkv[:, :Q_WIDTH]                                   # [S, nH*Dh]
    k = qkv[:, Q_WIDTH:Q_WIDTH + KV_WIDTH]                 # [S, nKV*Dh]
    v = qkv[:, Q_WIDTH + KV_WIDTH:]                        # [S, nKV*Dh]

    # ---- RoPE (tokens-major): x*cos + (x @ R_rotate_half) * sin ----
    q = (q * cosq_ref[...]
         + jnp.dot(q, rq_ref[...], preferred_element_type=jnp.float32)
         * sinq_ref[...])
    k = (k * cosk_ref[...]
         + jnp.dot(k, rk_ref[...], preferred_element_type=jnp.float32)
         * sink_ref[...])

    # ---- causal self-attention: all heads in this grid step, GQA sharing ----
    seq = h.shape[0]
    row = jax.lax.broadcasted_iota(jnp.int32, (seq, seq), 0)
    col = jax.lax.broadcasted_iota(jnp.int32, (seq, seq), 1)
    causal = col <= row
    rep = NUM_HEADS // NUM_KV_HEADS
    head_outs = []
    for hh in range(NUM_HEADS):                            # static unroll (4)
        qh = q[:, hh * HEAD_DIM:(hh + 1) * HEAD_DIM]
        kv = hh // rep                                     # zero-copy GQA
        kh = k[:, kv * HEAD_DIM:(kv + 1) * HEAD_DIM]
        vh = v[:, kv * HEAD_DIM:(kv + 1) * HEAD_DIM]
        s = jnp.dot(qh, kh.T, preferred_element_type=jnp.float32) * scale
        s = jnp.where(causal, s, -1e30)
        m = jnp.max(s, axis=-1, keepdims=True)
        p = jnp.exp(s - m)
        p = p * pl.reciprocal(jnp.sum(p, axis=-1, keepdims=True), approx=True)
        head_outs.append(jnp.dot(p, vh, preferred_element_type=jnp.float32))
    attn = jnp.concatenate(head_outs, axis=-1)             # [S, nH*Dh]
    attn_out = jnp.dot(attn, wo_ref[0], preferred_element_type=jnp.float32)

    # ---- residual add + post-attention RMSNorm + fused SwiGLU MLP ----
    h = h + attn_out
    n2 = _rms(h, post_norm_ref[0], eps)
    gu = jnp.dot(n2, wgu_ref[0], preferred_element_type=jnp.float32)  # [S, 2I]
    g = gu[:, :INTERMEDIATE]
    u = gu[:, INTERMEDIATE:]
    act = (g * jax.nn.sigmoid(g)) * u
    mlp_out = jnp.dot(act, wd_ref[0], preferred_element_type=jnp.float32)

    h = h + mlp_out
    h_scr[...] = h                                         # carry residual in VMEM

    # ---- final RMSNorm; single HBM store per batch block ----
    @pl.when(li == num_layers - 1)
    def _():
        o_ref[...] = _rms(h, fnorm_ref[...], eps).astype(o_ref.dtype)


# ------------------------------- model forward -------------------------------
def deepseek_forward(params, input_ids):
    B, S = input_ids.shape
    T = B * S
    scale = HEAD_DIM ** -0.5

    # TODO(synk): embedding gather stays as plain-JAX glue (one tiny take op).
    embeds = jnp.take(params["embed"], input_ids, axis=0).reshape(T, HIDDEN)

    # RoPE cos/sin tables, pre-tiled to the tokens-major per-head layout.
    inv_freq = 1.0 / (
        ROPE_THETA ** (jnp.arange(0, HEAD_DIM, 2, dtype=jnp.float32) / HEAD_DIM))
    freqs = jnp.arange(S, dtype=jnp.float32)[:, None] * inv_freq[None, :]
    emb = jnp.concatenate([freqs, freqs], axis=-1)          # [S, Dh]
    cos, sin = jnp.cos(emb), jnp.sin(emb)
    cos_q = jnp.tile(cos, (B, NUM_HEADS))                   # [T, nH*Dh]
    sin_q = jnp.tile(sin, (B, NUM_HEADS))
    cos_k = jnp.tile(cos, (B, NUM_KV_HEADS))                # [T, nKV*Dh]
    sin_k = jnp.tile(sin, (B, NUM_KV_HEADS))

    # Block-diagonal rotate_half matrices: x @ R == rotate_half(x), per head.
    half = HEAD_DIM // 2
    eye = jnp.eye(half, dtype=jnp.float32)
    zeros = jnp.zeros((half, half), jnp.float32)
    blk = jnp.block([[zeros, eye], [-eye, zeros]])
    rq = jnp.kron(jnp.eye(NUM_HEADS, dtype=jnp.float32), blk)      # [32, 32]
    rk = jnp.kron(jnp.eye(NUM_KV_HEADS, dtype=jnp.float32), blk)   # [16, 16]

    out = pl.pallas_call(
        functools.partial(_model_kernel, scale=scale, eps=RMS_EPS),
        out_shape=jax.ShapeDtypeStruct((T, HIDDEN), jnp.float32),
        grid=(B, NUM_LAYERS),
        in_specs=[
            pl.BlockSpec((S, HIDDEN), lambda b, l: (b, 0)),                 # embeds
            pl.BlockSpec((S, Q_WIDTH), lambda b, l: (b, 0)),                # cos_q
            pl.BlockSpec((S, Q_WIDTH), lambda b, l: (b, 0)),                # sin_q
            pl.BlockSpec((S, KV_WIDTH), lambda b, l: (b, 0)),               # cos_k
            pl.BlockSpec((S, KV_WIDTH), lambda b, l: (b, 0)),               # sin_k
            pl.BlockSpec((Q_WIDTH, Q_WIDTH), lambda b, l: (0, 0)),          # rq
            pl.BlockSpec((KV_WIDTH, KV_WIDTH), lambda b, l: (0, 0)),        # rk
            pl.BlockSpec((1, 1, HIDDEN), lambda b, l: (l, 0, 0)),           # in_norm
            pl.BlockSpec((1, 1, HIDDEN), lambda b, l: (l, 0, 0)),           # post_norm
            pl.BlockSpec((1, HIDDEN, QKV_WIDTH), lambda b, l: (l, 0, 0)),   # wqkv
            pl.BlockSpec((1, Q_WIDTH, HIDDEN), lambda b, l: (l, 0, 0)),     # wo
            pl.BlockSpec((1, HIDDEN, GU_WIDTH), lambda b, l: (l, 0, 0)),    # wgu
            pl.BlockSpec((1, INTERMEDIATE, HIDDEN), lambda b, l: (l, 0, 0)),  # wd
            pl.BlockSpec((1, HIDDEN), lambda b, l: (0, 0)),                 # final_norm
        ],
        out_specs=pl.BlockSpec((S, HIDDEN), lambda b, l: (b, 0)),
        scratch_shapes=[pltpu.VMEM((S, HIDDEN), jnp.float32)],
        compiler_params=pltpu.CompilerParams(
            dimension_semantics=("parallel", "arbitrary")),
    )(embeds, cos_q, sin_q, cos_k, sin_k, rq, rk,
      params["in_norm"], params["post_norm"], params["wqkv"], params["wo"],
      params["wgu"], params["wd"], params["final_norm"])

    return out.reshape(B, S, HIDDEN)    # == last_hidden_state


# ------------------------------- parameter init -------------------------------
def init_params(key):
    def dense(k, shape, std=0.02):
        return std * jax.random.normal(k, shape, dtype=jnp.float32)

    k = jax.random.split(key, 5)
    return {
        "embed": dense(k[0], (VOCAB, HIDDEN)),
        "in_norm": jnp.ones((NUM_LAYERS, 1, HIDDEN), jnp.float32),
        "post_norm": jnp.ones((NUM_LAYERS, 1, HIDDEN), jnp.float32),
        "final_norm": jnp.ones((1, HIDDEN), jnp.float32),
        "wqkv": dense(k[1], (NUM_LAYERS, HIDDEN, QKV_WIDTH)),    # [Wq|Wk|Wv]
        "wo": dense(k[2], (NUM_LAYERS, Q_WIDTH, HIDDEN)),
        "wgu": dense(k[3], (NUM_LAYERS, HIDDEN, GU_WIDTH)),      # [Wg|Wu]
        "wd": dense(k[4], (NUM_LAYERS, INTERMEDIATE, HIDDEN)),
    }


# ------------------------------------ main ------------------------------------
if __name__ == "__main__":
    key = jax.random.PRNGKey(0)
    pkey, dkey = jax.random.split(key)
    params = init_params(pkey)
    input_ids = jax.random.randint(dkey, (BATCH, SEQ), 0, VOCAB, dtype=jnp.int32)

    fwd = jax.jit(deepseek_forward)
    last_hidden_state = fwd(params, input_ids)
    jax.block_until_ready(last_hidden_state)

    assert last_hidden_state.shape == (BATCH, SEQ, HIDDEN)
    assert bool(jnp.all(jnp.isfinite(last_hidden_state)))
    print("KERNEL_OK")
</pallas_src>

<mosaic_0001>
module attributes {stable_mosaic.version = 11 : i64} {
  func.func @_model_kernel(%arg0: i32, %arg1: i32, %arg2: memref<8x32xf32, #tpu.memory_space<vmem>>, %arg3: memref<8x32xf32, #tpu.memory_space<vmem>>, %arg4: memref<8x32xf32, #tpu.memory_space<vmem>>, %arg5: memref<8x16xf32, #tpu.memory_space<vmem>>, %arg6: memref<8x16xf32, #tpu.memory_space<vmem>>, %arg7: memref<32x32xf32, #tpu.memory_space<vmem>>, %arg8: memref<16x16xf32, #tpu.memory_space<vmem>>, %arg9: memref<1x1x32xf32, #tpu.memory_space<vmem>>, %arg10: memref<1x1x32xf32, #tpu.memory_space<vmem>>, %arg11: memref<1x32x64xf32, #tpu.memory_space<vmem>>, %arg12: memref<1x32x32xf32, #tpu.memory_space<vmem>>, %arg13: memref<1x32x128xf32, #tpu.memory_space<vmem>>, %arg14: memref<1x64x32xf32, #tpu.memory_space<vmem>>, %arg15: memref<1x32xf32, #tpu.memory_space<vmem>>, %arg16: memref<8x32xf32, #tpu.memory_space<vmem>>, %arg17: memref<8x32xf32, #tpu.memory_space<vmem>>) attributes {dimension_semantics = [#tpu.dimension_semantics<parallel>, #tpu.dimension_semantics<arbitrary>], iteration_bounds = array<i64: 2, 2>, scalar_prefetch = 0 : i64, scratch_operands = 1 : i64, tpu.core_type = #tpu.core_type<tc>, window_params = [{transform_indices = @transform_0, window_bounds = array<i64: 8, 32>}, {transform_indices = @transform_1, window_bounds = array<i64: 8, 32>}, {transform_indices = @transform_2, window_bounds = array<i64: 8, 32>}, {transform_indices = @transform_3, window_bounds = array<i64: 8, 16>}, {transform_indices = @transform_4, window_bounds = array<i64: 8, 16>}, {pipeline_mode = #tpu.pipeline_mode<synchronous>, transform_indices = @transform_5, window_bounds = array<i64: 32, 32>}, {pipeline_mode = #tpu.pipeline_mode<synchronous>, transform_indices = @transform_6, window_bounds = array<i64: 16, 16>}, {transform_indices = @transform_7, window_bounds = array<i64: 1, 1, 32>}, {transform_indices = @transform_8, window_bounds = array<i64: 1, 1, 32>}, {transform_indices = @transform_9, window_bounds = array<i64: 1, 32, 64>}, {transform_indices = @transform_10, window_bounds = array<i64: 1, 32, 32>}, {transform_indices = @transform_11, window_bounds = array<i64: 1, 32, 128>}, {transform_indices = @transform_12, window_bounds = array<i64: 1, 64, 32>}, {pipeline_mode = #tpu.pipeline_mode<synchronous>, transform_indices = @transform_13, window_bounds = array<i64: 1, 32>}, {transform_indices = @transform_14, window_bounds = array<i64: 8, 32>}]} {
    %c0_i32 = arith.constant 0 : i32
    %0 = arith.cmpi eq, %arg1, %c0_i32 : i32
    %1 = arith.extui %0 : i1 to i32
    %c0_i32_0 = arith.constant 0 : i32
    %2 = arith.cmpi ne, %1, %c0_i32_0 : i32
    scf.if %2 {
      %c0_71 = arith.constant 0 : index
      %c0_72 = arith.constant 0 : index
      %160 = vector.load %arg2[%c0_71, %c0_72] : memref<8x32xf32, #tpu.memory_space<vmem>>, vector<8x32xf32>
      %c0_73 = arith.constant 0 : index
      %c0_74 = arith.constant 0 : index
      %161 = vector.load %arg17[%c0_73, %c0_74] : memref<8x32xf32, #tpu.memory_space<vmem>>, vector<8x32xf32>
      tpu.vector_store %arg17[%c0_73, %c0_74], %160 {strides = array<i32>} : memref<8x32xf32, #tpu.memory_space<vmem>>, vector<8x32xf32>,
    } else {
    }
    %c0 = arith.constant 0 : index
    %c0_1 = arith.constant 0 : index
    %3 = vector.load %arg17[%c0, %c0_1] : memref<8x32xf32, #tpu.memory_space<vmem>>, vector<8x32xf32>
    %c0_2 = arith.constant 0 : index
    %c0_3 = arith.constant 0 : index
    %c0_4 = arith.constant 0 : index
    %4 = vector.load %arg9[%c0_2, %c0_3, %c0_4] : memref<1x1x32xf32, #tpu.memory_space<vmem>>, vector<1x1x32xf32>
    %5 = vector.shape_cast %4 : vector<1x1x32xf32> to vector<1x32xf32>
    %6 = arith.mulf %3, %3 : vector<8x32xf32>
    %cst = arith.constant dense<0.000000e+00> : vector<8xf32>
    %7 = vector.multi_reduction <add>, %6, %cst [1] : vector<8x32xf32> to vector<8xf32>
    %8 = vector.shape_cast %7 : vector<8xf32> to vector<8x1xf32>
    %cst_5 = arith.constant 3.200000e+01 : f32
    %9 = vector.broadcast %cst_5 : f32 to vector<8x1xf32>
    %10 = arith.divf %8, %9 : vector<8x1xf32>
    %cst_6 = arith.constant 9.99999997E-7 : f32
    %11 = vector.broadcast %cst_6 : f32 to vector<8x1xf32>
    %12 = arith.addf %10, %11 : vector<8x1xf32>
    %13 = math.rsqrt %12 : vector<8x1xf32>
    %14 = vector.broadcast %13 : vector<8x1xf32> to vector<8x32xf32>
    %15 = arith.mulf %3, %14 : vector<8x32xf32>
    %16 = vector.broadcast %5 : vector<1x32xf32> to vector<8x32xf32>
    %17 = arith.mulf %15, %16 : vector<8x32xf32>
    %c0_7 = arith.constant 0 : index
    %c0_8 = arith.constant 0 : index
    %c0_9 = arith.constant 0 : index
    %18 = vector.load %arg11[%c0_7, %c0_8, %c0_9] : memref<1x32x64xf32, #tpu.memory_space<vmem>>, vector<1x32x64xf32>
    %19 = vector.shape_cast %18 : vector<1x32x64xf32> to vector<32x64xf32>
    %cst_10 = arith.constant dense<0.000000e+00> : vector<8x64xf32>
    %20 = tpu.matmul %17, %19, %cst_10 {dimension_numbers = #tpu.dot_dimension_numbers<[1], [0], [0], [1], [0, 0, 1, 1], [], []>} : vector<8x32xf32>, vector<32x64xf32>, vector<8x64xf32> -> vector<8x64xf32>
    %21 = vector.extract_strided_slice %20 {offsets = [0, 0], sizes = [8, 32], strides = [1, 1]} : vector<8x64xf32> to vector<8x32xf32>
    %22 = vector.extract_strided_slice %20 {offsets = [0, 32], sizes = [8, 16], strides = [1, 1]} : vector<8x64xf32> to vector<8x16xf32>
    %23 = vector.extract_strided_slice %20 {offsets = [0, 48], sizes = [8, 16], strides = [1, 1]} : vector<8x64xf32> to vector<8x16xf32>
    %c0_11 = arith.constant 0 : index
    %c0_12 = arith.constant 0 : index
    %24 = vector.load %arg3[%c0_11, %c0_12] : memref<8x32xf32, #tpu.memory_space<vmem>>, vector<8x32xf32>
    %25 = arith.mulf %21, %24 : vector<8x32xf32>
    %c0_13 = arith.constant 0 : index
    %c0_14 = arith.constant 0 : index
    %26 = vector.load %arg7[%c0_13, %c0_14] : memref<32x32xf32, #tpu.memory_space<vmem>>, vector<32x32xf32>
    %cst_15 = arith.constant dense<0.000000e+00> : vector<8x32xf32>
    %27 = tpu.matmul %21, %26, %cst_15 {dimension_numbers = #tpu.dot_dimension_numbers<[1], [0], [0], [1], [0, 0, 1, 1], [], []>} : vector<8x32xf32>, vector<32x32xf32>, vector<8x32xf32> -> vector<8x32xf32>
    %c0_16 = arith.constant 0 : index
    %c0_17 = arith.constant 0 : index
    %28 = vector.load %arg4[%c0_16, %c0_17] : memref<8x32xf32, #tpu.memory_space<vmem>>, vector<8x32xf32>
    %29 = arith.mulf %27, %28 : vector<8x32xf32>
    %30 = arith.addf %25, %29 : vector<8x32xf32>
    %c0_18 = arith.constant 0 : index
    %c0_19 = arith.constant 0 : index
    %31 = vector.load %arg5[%c0_18, %c0_19] : memref<8x16xf32, #tpu.memory_space<vmem>>, vector<8x16xf32>
    %32 = arith.mulf %22, %31 : vector<8x16xf32>
    %c0_20 = arith.constant 0 : index
    %c0_21 = arith.constant 0 : index
    %33 = vector.load %arg8[%c0_20, %c0_21] : memref<16x16xf32, #tpu.memory_space<vmem>>, vector<16x16xf32>
    %cst_22 = arith.constant dense<0.000000e+00> : vector<8x16xf32>
    %34 = tpu.matmul %22, %33, %cst_22 {dimension_numbers = #tpu.dot_dimension_numbers<[1], [0], [0], [1], [0, 0, 1, 1], [], []>} : vector<8x16xf32>, vector<16x16xf32>, vector<8x16xf32> -> vector<8x16xf32>
    %c0_23 = arith.constant 0 : index
    %c0_24 = arith.constant 0 : index
    %35 = vector.load %arg6[%c0_23, %c0_24] : memref<8x16xf32, #tpu.memory_space<vmem>>, vector<8x16xf32>
    %36 = arith.mulf %34, %35 : vector<8x16xf32>
    %37 = arith.addf %32, %36 : vector<8x16xf32>
    %38 = tpu.iota {dimensions = array<i32: 0>} : vector<8x8xi32>
    %39 = tpu.iota {dimensions = array<i32: 1>} : vector<8x8xi32>
    %40 = arith.cmpi sle, %39, %38 : vector<8x8xi32>
    %41 = vector.extract_strided_slice %30 {offsets = [0, 0], sizes = [8, 8], strides = [1, 1]} : vector<8x32xf32> to vector<8x8xf32>
    %42 = vector.extract_strided_slice %37 {offsets = [0, 0], sizes = [8, 8], strides = [1, 1]} : vector<8x16xf32> to vector<8x8xf32>
    %43 = vector.extract_strided_slice %23 {offsets = [0, 0], sizes = [8, 8], strides = [1, 1]} : vector<8x16xf32> to vector<8x8xf32>
    %44 = tpu.transpose %42, [1, 0] : vector<8x8xf32> -> vector<8x8xf32>
    %cst_25 = arith.constant dense<0.000000e+00> : vector<8x8xf32>
    %45 = tpu.matmul %41, %44, %cst_25 {dimension_numbers = #tpu.dot_dimension_numbers<[1], [0], [0], [1], [0, 0, 1, 1], [], []>} : vector<8x8xf32>, vector<8x8xf32>, vector<8x8xf32> -> vector<8x8xf32>
    %cst_26 = arith.constant 0.353553385 : f32
    %46 = vector.broadcast %cst_26 : f32 to vector<8x8xf32>
    %47 = arith.mulf %45, %46 : vector<8x8xf32>
    %cst_27 = arith.constant -1.000000e+30 : f32
    %48 = vector.broadcast %cst_27 : f32 to vector<8x8xf32>
    %49 = arith.select %40, %47, %48 : vector<8x8xi1>, vector<8x8xf32>
    %cst_28 = arith.constant dense<0xFF800000> : vector<8xf32>
    %50 = vector.multi_reduction <maximumf>, %49, %cst_28 [1] : vector<8x8xf32> to vector<8xf32>
    %51 = vector.shape_cast %50 : vector<8xf32> to vector<8x1xf32>
    %52 = vector.broadcast %51 : vector<8x1xf32> to vector<8x8xf32>
    %53 = arith.subf %49, %52 : vector<8x8xf32>
    %54 = math.exp %53 : vector<8x8xf32>
    %cst_29 = arith.constant dense<0.000000e+00> : vector<8xf32>
    %55 = vector.multi_reduction <add>, %54, %cst_29 [1] : vector<8x8xf32> to vector<8xf32>
    %56 = vector.shape_cast %55 : vector<8xf32> to vector<8x1xf32>
    %57 = tpu.reciprocal %56 {approx = true} : vector<8x1xf32> -> vector<8x1xf32>
    %58 = vector.broadcast %57 : vector<8x1xf32> to vector<8x8xf32>
    %59 = arith.mulf %54, %58 : vector<8x8xf32>
    %cst_30 = arith.constant dense<0.000000e+00> : vector<8x8xf32>
    %60 = tpu.matmul %59, %43, %cst_30 {dimension_numbers = #tpu.dot_dimension_numbers<[1], [0], [0], [1], [0, 0, 1, 1], [], []>} : vector<8x8xf32>, vector<8x8xf32>, vector<8x8xf32> -> vector<8x8xf32>
    %61 = vector.extract_strided_slice %30 {offsets = [0, 8], sizes = [8, 8], strides = [1, 1]} : vector<8x32xf32> to vector<8x8xf32>
    %62 = vector.extract_strided_slice %37 {offsets = [0, 0], sizes = [8, 8], strides = [1, 1]} : vector<8x16xf32> to vector<8x8xf32>
    %63 = vector.extract_strided_slice %23 {offsets = [0, 0], sizes = [8, 8], strides = [1, 1]} : vector<8x16xf32> to vector<8x8xf32>
    %64 = tpu.transpose %62, [1, 0] : vector<8x8xf32> -> vector<8x8xf32>
    %cst_31 = arith.constant dense<0.000000e+00> : vector<8x8xf32>
    %65 = tpu.matmul %61, %64, %cst_31 {dimension_numbers = #tpu.dot_dimension_numbers<[1], [0], [0], [1], [0, 0, 1, 1], [], []>} : vector<8x8xf32>, vector<8x8xf32>, vector<8x8xf32> -> vector<8x8xf32>
    %cst_32 = arith.constant 0.353553385 : f32
    %66 = vector.broadcast %cst_32 : f32 to vector<8x8xf32>
    %67 = arith.mulf %65, %66 : vector<8x8xf32>
    %cst_33 = arith.constant -1.000000e+30 : f32
    %68 = vector.broadcast %cst_33 : f32 to vector<8x8xf32>
    %69 = arith.select %40, %67, %68 : vector<8x8xi1>, vector<8x8xf32>
    %cst_34 = arith.constant dense<0xFF800000> : vector<8xf32>
    %70 = vector.multi_reduction <maximumf>, %69, %cst_34 [1] : vector<8x8xf32> to vector<8xf32>
    %71 = vector.shape_cast %70 : vector<8xf32> to vector<8x1xf32>
    %72 = vector.broadcast %71 : vector<8x1xf32> to vector<8x8xf32>
    %73 = arith.subf %69, %72 : vector<8x8xf32>
    %74 = math.exp %73 : vector<8x8xf32>
    %cst_35 = arith.constant dense<0.000000e+00> : vector<8xf32>
    %75 = vector.multi_reduction <add>, %74, %cst_35 [1] : vector<8x8xf32> to vector<8xf32>
    %76 = vector.shape_cast %75 : vector<8xf32> to vector<8x1xf32>
    %77 = tpu.reciprocal %76 {approx = true} : vector<8x1xf32> -> vector<8x1xf32>
    %78 = vector.broadcast %77 : vector<8x1xf32> to vector<8x8xf32>
    %79 = arith.mulf %74, %78 : vector<8x8xf32>
    %cst_36 = arith.constant dense<0.000000e+00> : vector<8x8xf32>
    %80 = tpu.matmul %79, %63, %cst_36 {dimension_numbers = #tpu.dot_dimension_numbers<[1], [0], [0], [1], [0, 0, 1, 1], [], []>} : vector<8x8xf32>, vector<8x8xf32>, vector<8x8xf32> -> vector<8x8xf32>
    %81 = vector.extract_strided_slice %30 {offsets = [0, 16], sizes = [8, 8], strides = [1, 1]} : vector<8x32xf32> to vector<8x8xf32>
    %82 = vector.extract_strided_slice %37 {offsets = [0, 8], sizes = [8, 8], strides = [1, 1]} : vector<8x16xf32> to vector<8x8xf32>
    %83 = vector.extract_strided_slice %23 {offsets = [0, 8], sizes = [8, 8], strides = [1, 1]} : vector<8x16xf32> to vector<8x8xf32>
    %84 = tpu.transpose %82, [1, 0] : vector<8x8xf32> -> vector<8x8xf32>
    %cst_37 = arith.constant dense<0.000000e+00> : vector<8x8xf32>
    %85 = tpu.matmul %81, %84, %cst_37 {dimension_numbers = #tpu.dot_dimension_numbers<[1], [0], [0], [1], [0, 0, 1, 1], [], []>} : vector<8x8xf32>, vector<8x8xf32>, vector<8x8xf32> -> vector<8x8xf32>
    %cst_38 = arith.constant 0.353553385 : f32
    %86 = vector.broadcast %cst_38 : f32 to vector<8x8xf32>
    %87 = arith.mulf %85, %86 : vector<8x8xf32>
    %cst_39 = arith.constant -1.000000e+30 : f32
    %88 = vector.broadcast %cst_39 : f32 to vector<8x8xf32>
    %89 = arith.select %40, %87, %88 : vector<8x8xi1>, vector<8x8xf32>
    %cst_40 = arith.constant dense<0xFF800000> : vector<8xf32>
    %90 = vector.multi_reduction <maximumf>, %89, %cst_40 [1] : vector<8x8xf32> to vector<8xf32>
    %91 = vector.shape_cast %90 : vector<8xf32> to vector<8x1xf32>
    %92 = vector.broadcast %91 : vector<8x1xf32> to vector<8x8xf32>
    %93 = arith.subf %89, %92 : vector<8x8xf32>
    %94 = math.exp %93 : vector<8x8xf32>
    %cst_41 = arith.constant dense<0.000000e+00> : vector<8xf32>
    %95 = vector.multi_reduction <add>, %94, %cst_41 [1] : vector<8x8xf32> to vector<8xf32>
    %96 = vector.shape_cast %95 : vector<8xf32> to vector<8x1xf32>
    %97 = tpu.reciprocal %96 {approx = true} : vector<8x1xf32> -> vector<8x1xf32>
    %98 = vector.broadcast %97 : vector<8x1xf32> to vector<8x8xf32>
    %99 = arith.mulf %94, %98 : vector<8x8xf32>
    %cst_42 = arith.constant dense<0.000000e+00> : vector<8x8xf32>
    %100 = tpu.matmul %99, %83, %cst_42 {dimension_numbers = #tpu.dot_dimension_numbers<[1], [0], [0], [1], [0, 0, 1, 1], [], []>} : vector<8x8xf32>, vector<8x8xf32>, vector<8x8xf32> -> vector<8x8xf32>
    %101 = vector.extract_strided_slice %30 {offsets = [0, 24], sizes = [8, 8], strides = [1, 1]} : vector<8x32xf32> to vector<8x8xf32>
    %102 = vector.extract_strided_slice %37 {offsets = [0, 8], sizes = [8, 8], strides = [1, 1]} : vector<8x16xf32> to vector<8x8xf32>
    %103 = vector.extract_strided_slice %23 {offsets = [0, 8], sizes = [8, 8], strides = [1, 1]} : vector<8x16xf32> to vector<8x8xf32>
    %104 = tpu.transpose %102, [1, 0] : vector<8x8xf32> -> vector<8x8xf32>
    %cst_43 = arith.constant dense<0.000000e+00> : vector<8x8xf32>
    %105 = tpu.matmul %101, %104, %cst_43 {dimension_numbers = #tpu.dot_dimension_numbers<[1], [0], [0], [1], [0, 0, 1, 1], [], []>} : vector<8x8xf32>, vector<8x8xf32>, vector<8x8xf32> -> vector<8x8xf32>
    %cst_44 = arith.constant 0.353553385 : f32
    %106 = vector.broadcast %cst_44 : f32 to vector<8x8xf32>
    %107 = arith.mulf %105, %106 : vector<8x8xf32>
    %cst_45 = arith.constant -1.000000e+30 : f32
    %108 = vector.broadcast %cst_45 : f32 to vector<8x8xf32>
    %109 = arith.select %40, %107, %108 : vector<8x8xi1>, vector<8x8xf32>
    %cst_46 = arith.constant dense<0xFF800000> : vector<8xf32>
    %110 = vector.multi_reduction <maximumf>, %109, %cst_46 [1] : vector<8x8xf32> to vector<8xf32>
    %111 = vector.shape_cast %110 : vector<8xf32> to vector<8x1xf32>
    %112 = vector.broadcast %111 : vector<8x1xf32> to vector<8x8xf32>
    %113 = arith.subf %109, %112 : vector<8x8xf32>
    %114 = math.exp %113 : vector<8x8xf32>
    %cst_47 = arith.constant dense<0.000000e+00> : vector<8xf32>
    %115 = vector.multi_reduction <add>, %114, %cst_47 [1] : vector<8x8xf32> to vector<8xf32>
    %116 = vector.shape_cast %115 : vector<8xf32> to vector<8x1xf32>
    %117 = tpu.reciprocal %116 {approx = true} : vector<8x1xf32> -> vector<8x1xf32>
    %118 = vector.broadcast %117 : vector<8x1xf32> to vector<8x8xf32>
    %119 = arith.mulf %114, %118 : vector<8x8xf32>
    %cst_48 = arith.constant dense<0.000000e+00> : vector<8x8xf32>
    %120 = tpu.matmul %119, %103, %cst_48 {dimension_numbers = #tpu.dot_dimension_numbers<[1], [0], [0], [1], [0, 0, 1, 1], [], []>} : vector<8x8xf32>, vector<8x8xf32>, vector<8x8xf32> -> vector<8x8xf32>
    %121 = tpu.concatenate %60, %80, %100, %120 in 1 : vector<8x8xf32>, vector<8x8xf32>, vector<8x8xf32>, vector<8x8xf32> -> vector<8x32xf32>
    %c0_49 = arith.constant 0 : index
    %c0_50 = arith.constant 0 : index
    %c0_51 = arith.constant 0 : index
    %122 = vector.load %arg12[%c0_49, %c0_50, %c0_51] : memref<1x32x32xf32, #tpu.memory_space<vmem>>, vector<1x32x32xf32>
    %123 = vector.shape_cast %122 : vector<1x32x32xf32> to vector<32x32xf32>
    %cst_52 = arith.constant dense<0.000000e+00> : vector<8x32xf32>
    %124 = tpu.matmul %121, %123, %cst_52 {dimension_numbers = #tpu.dot_dimension_numbers<[1], [0], [0], [1], [0, 0, 1, 1], [], []>} : vector<8x32xf32>, vector<32x32xf32>, vector<8x32xf32> -> vector<8x32xf32>
    %125 = arith.addf %3, %124 : vector<8x32xf32>
    %c0_53 = arith.constant 0 : index
    %c0_54 = arith.constant 0 : index
    %c0_55 = arith.constant 0 : index
    %126 = vector.load %arg10[%c0_53, %c0_54, %c0_55] : memref<1x1x32xf32, #tpu.memory_space<vmem>>, vector<1x1x32xf32>
    %127 = vector.shape_cast %126 : vector<1x1x32xf32> to vector<1x32xf32>
    %128 = arith.mulf %125, %125 : vector<8x32xf32>
    %cst_56 = arith.constant dense<0.000000e+00> : vector<8xf32>
    %129 = vector.multi_reduction <add>, %128, %cst_56 [1] : vector<8x32xf32> to vector<8xf32>
    %130 = vector.shape_cast %129 : vector<8xf32> to vector<8x1xf32>
    %cst_57 = arith.constant 3.200000e+01 : f32
    %131 = vector.broadcast %cst_57 : f32 to vector<8x1xf32>
    %132 = arith.divf %130, %131 : vector<8x1xf32>
    %cst_58 = arith.constant 9.99999997E-7 : f32
    %133 = vector.broadcast %cst_58 : f32 to vector<8x1xf32>
    %134 = arith.addf %132, %133 : vector<8x1xf32>
    %135 = math.rsqrt %134 : vector<8x1xf32>
    %136 = vector.broadcast %135 : vector<8x1xf32> to vector<8x32xf32>
    %137 = arith.mulf %125, %136 : vector<8x32xf32>
    %138 = vector.broadcast %127 : vector<1x32xf32> to vector<8x32xf32>
    %139 = arith.mulf %137, %138 : vector<8x32xf32>
    %c0_59 = arith.constant 0 : index
    %c0_60 = arith.constant 0 : index
    %c0_61 = arith.constant 0 : index
    %140 = vector.load %arg13[%c0_59, %c0_60, %c0_61] : memref<1x32x128xf32, #tpu.memory_space<vmem>>, vector<1x32x128xf32>
    %141 = vector.shape_cast %140 : vector<1x32x128xf32> to vector<32x128xf32>
    %cst_62 = arith.constant dense<0.000000e+00> : vector<8x128xf32>
    %142 = tpu.matmul %139, %141, %cst_62 {dimension_numbers = #tpu.dot_dimension_numbers<[1], [0], [0], [1], [0, 0, 1, 1], [], []>} : vector<8x32xf32>, vector<32x128xf32>, vector<8x128xf32> -> vector<8x128xf32>
    %143 = vector.extract_strided_slice %142 {offsets = [0, 0], sizes = [8, 64], strides = [1, 1]} : vector<8x128xf32> to vector<8x64xf32>
    %144 = vector.extract_strided_slice %142 {offsets = [0, 64], sizes = [8, 64], strides = [1, 1]} : vector<8x128xf32> to vector<8x64xf32>
    %145 = arith.negf %143 : vector<8x64xf32>
    %146 = math.exp %145 : vector<8x64xf32>
    %cst_63 = arith.constant 1.000000e+00 : f32
    %147 = vector.broadcast %cst_63 : f32 to vector<8x64xf32>
    %148 = arith.addf %147, %146 : vector<8x64xf32>
    %149 = arith.divf %147, %148 : vector<8x64xf32>
    %150 = arith.mulf %143, %149 : vector<8x64xf32>
    %151 = arith.mulf %150, %144 : vector<8x64xf32>
    %c0_64 = arith.constant 0 : index
    %c0_65 = arith.constant 0 : index
    %c0_66 = arith.constant 0 : index
    %152 = vector.load %arg14[%c0_64, %c0_65, %c0_66] : memref<1x64x32xf32, #tpu.memory_space<vmem>>, vector<1x64x32xf32>
    %153 = vector.shape_cast %152 : vector<1x64x32xf32> to vector<64x32xf32>
    %cst_67 = arith.constant dense<0.000000e+00> : vector<8x32xf32>
    %154 = tpu.matmul %151, %153, %cst_67 {dimension_numbers = #tpu.dot_dimension_numbers<[1], [0], [0], [1], [0, 0, 1, 1], [], []>} : vector<8x64xf32>, vector<64x32xf32>, vector<8x32xf32> -> vector<8x32xf32>
    %155 = arith.addf %125, %154 : vector<8x32xf32>
    %c0_68 = arith.constant 0 : index
    %c0_69 = arith.constant 0 : index
    %156 = vector.load %arg17[%c0_68, %c0_69] : memref<8x32xf32, #tpu.memory_space<vmem>>, vector<8x32xf32>
    tpu.vector_store %arg17[%c0_68, %c0_69], %155 {strides = array<i32>} : memref<8x32xf32, #tpu.memory_space<vmem>>, vector<8x32xf32>,
    %c1_i32 = arith.constant 1 : i32
    %157 = arith.cmpi eq, %arg1, %c1_i32 : i32
    %158 = arith.extui %157 : i1 to i32
    %c0_i32_70 = arith.constant 0 : i32
    %159 = arith.cmpi ne, %158, %c0_i32_70 : i32
    scf.if %159 {
      %c0_71 = arith.constant 0 : index
      %c0_72 = arith.constant 0 : index
      %160 = vector.load %arg15[%c0_71, %c0_72] : memref<1x32xf32, #tpu.memory_space<vmem>>, vector<1x32xf32>
      %161 = arith.mulf %155, %155 : vector<8x32xf32>
      %cst_73 = arith.constant dense<0.000000e+00> : vector<8xf32>
      %162 = vector.multi_reduction <add>, %161, %cst_73 [1] : vector<8x32xf32> to vector<8xf32>
      %163 = vector.shape_cast %162 : vector<8xf32> to vector<8x1xf32>
      %cst_74 = arith.constant 3.200000e+01 : f32
      %164 = vector.broadcast %cst_74 : f32 to vector<8x1xf32>
      %165 = arith.divf %163, %164 : vector<8x1xf32>
      %cst_75 = arith.constant 9.99999997E-7 : f32
      %166 = vector.broadcast %cst_75 : f32 to vector<8x1xf32>
      %167 = arith.addf %165, %166 : vector<8x1xf32>
      %168 = math.rsqrt %167 : vector<8x1xf32>
      %169 = vector.broadcast %168 : vector<8x1xf32> to vector<8x32xf32>
      %170 = arith.mulf %155, %169 : vector<8x32xf32>
      %171 = vector.broadcast %160 : vector<1x32xf32> to vector<8x32xf32>
      %172 = arith.mulf %170, %171 : vector<8x32xf32>
      %c0_76 = arith.constant 0 : index
      %c0_77 = arith.constant 0 : index
      %173 = vector.load %arg16[%c0_76, %c0_77] : memref<8x32xf32, #tpu.memory_space<vmem>>, vector<8x32xf32>
      tpu.vector_store %arg16[%c0_76, %c0_77], %172 {strides = array<i32>} : memref<8x32xf32, #tpu.memory_space<vmem>>, vector<8x32xf32>,
    } else {
    }
    return
  }
  func.func @transform_0(%arg0: i32, %arg1: i32) -> (i32, i32) {
    %c0_i32 = arith.constant 0 : i32
    %c0_i32_0 = arith.constant 0 : i32
    return %arg0, %c0_i32 : i32, i32
  }
  func.func @transform_1(%arg0: i32, %arg1: i32) -> (i32, i32) {
    %c0_i32 = arith.constant 0 : i32
    %c0_i32_0 = arith.constant 0 : i32
    return %arg0, %c0_i32 : i32, i32
  }
  func.func @transform_2(%arg0: i32, %arg1: i32) -> (i32, i32) {
    %c0_i32 = arith.constant 0 : i32
    %c0_i32_0 = arith.constant 0 : i32
    return %arg0, %c0_i32 : i32, i32
  }
  func.func @transform_3(%arg0: i32, %arg1: i32) -> (i32, i32) {
    %c0_i32 = arith.constant 0 : i32
    %c0_i32_0 = arith.constant 0 : i32
    return %arg0, %c0_i32 : i32, i32
  }
  func.func @transform_4(%arg0: i32, %arg1: i32) -> (i32, i32) {
    %c0_i32 = arith.constant 0 : i32
    %c0_i32_0 = arith.constant 0 : i32
    return %arg0, %c0_i32 : i32, i32
  }
  func.func @transform_5(%arg0: i32, %arg1: i32) -> (i32, i32) {
    %c0_i32 = arith.constant 0 : i32
    %c0_i32_0 = arith.constant 0 : i32
    %c0_i32_1 = arith.constant 0 : i32
    return %c0_i32, %c0_i32_0 : i32, i32
  }
  func.func @transform_6(%arg0: i32, %arg1: i32) -> (i32, i32) {
    %c0_i32 = arith.constant 0 : i32
    %c0_i32_0 = arith.constant 0 : i32
    %c0_i32_1 = arith.constant 0 : i32
    return %c0_i32, %c0_i32_0 : i32, i32
  }
  func.func @transform_7(%arg0: i32, %arg1: i32) -> (i32, i32, i32) {
    %c0_i32 = arith.constant 0 : i32
    %c0_i32_0 = arith.constant 0 : i32
    %c0_i32_1 = arith.constant 0 : i32
    return %arg1, %c0_i32, %c0_i32_0 : i32, i32, i32
  }
  func.func @transform_8(%arg0: i32, %arg1: i32) -> (i32, i32, i32) {
    %c0_i32 = arith.constant 0 : i32
    %c0_i32_0 = arith.constant 0 : i32
    %c0_i32_1 = arith.constant 0 : i32
    return %arg1, %c0_i32, %c0_i32_0 : i32, i32, i32
  }
  func.func @transform_9(%arg0: i32, %arg1: i32) -> (i32, i32, i32) {
    %c0_i32 = arith.constant 0 : i32
    %c0_i32_0 = arith.constant 0 : i32
    %c0_i32_1 = arith.constant 0 : i32
    return %arg1, %c0_i32, %c0_i32_0 : i32, i32, i32
  }
  func.func @transform_10(%arg0: i32, %arg1: i32) -> (i32, i32, i32) {
    %c0_i32 = arith.constant 0 : i32
    %c0_i32_0 = arith.constant 0 : i32
    %c0_i32_1 = arith.constant 0 : i32
    return %arg1, %c0_i32, %c0_i32_0 : i32, i32, i32
  }
  func.func @transform_11(%arg0: i32, %arg1: i32) -> (i32, i32, i32) {
    %c0_i32 = arith.constant 0 : i32
    %c0_i32_0 = arith.constant 0 : i32
    %c0_i32_1 = arith.constant 0 : i32
    return %arg1, %c0_i32, %c0_i32_0 : i32, i32, i32
  }
  func.func @transform_12(%arg0: i32, %arg1: i32) -> (i32, i32, i32) {
    %c0_i32 = arith.constant 0 : i32
    %c0_i32_0 = arith.constant 0 : i32
    %c0_i32_1 = arith.constant 0 : i32
    return %arg1, %c0_i32, %c0_i32_0 : i32, i32, i32
  }
  func.func @transform_13(%arg0: i32, %arg1: i32) -> (i32, i32) {
    %c0_i32 = arith.constant 0 : i32
    %c0_i32_0 = arith.constant 0 : i32
    %c0_i32_1 = arith.constant 0 : i32
    return %c0_i32, %c0_i32_0 : i32, i32
  }
  func.func @transform_14(%arg0: i32, %arg1: i32) -> (i32, i32) {
    %c0_i32 = arith.constant 0 : i32
    %c0_i32_0 = arith.constant 0 : i32
    return %arg0, %c0_i32 : i32, i32
  }
}

</mosaic_0001>

<bundles_post_ra>
// kernel: tile.38
= control target key start
LH: loop header
LB: loop body
LE: loop exit
PB: predicated region body
PF: predicated region fallthrough
CT: control target
= control target key end

     0   :  { %s154_s0 = inlined_call_operand.vmem [shape: f32[8,8], index: 0, kind: input, shape index: {}]   ;;  %s155_s1 = inlined_call_operand.vmem [shape: f32[2,8,2,8], index: 1, kind: output, shape index: {}]  }
   0x1   :  { %v4_v0 = vld [vmem:[%s154_s0] ss:$0 sm:$0xff]  ;;  %v51_v1 = vld [vmem:[%s154_s0 + $0x1] ss:$0 sm:$0xff]  ;;  %v54_v2 = vld [vmem:[%s154_s0 + $0x2] ss:$0 sm:$0xff] }
   0x2   :  { %5 = vst [vmem:[%s155_s1] sm:$0x3] %v4_v0  ;;  %50 = vst [vmem:[%s155_s1 + $0x10] sm:$0x3] %v4_v0  ;;  %v57_v3 = vld [vmem:[%s154_s0 + $0x3] ss:$0 sm:$0xff] }
   0x3   :  { %52 = vst [vmem:[%s155_s1 + $0x2] sm:$0x3] %v51_v1  ;;  %53 = vst [vmem:[%s155_s1 + $0x12] sm:$0x3] %v51_v1  ;;  %v60_v4 = vld [vmem:[%s154_s0 + $0x4] ss:$0 sm:$0xff] }
   0x4   :  { %55 = vst [vmem:[%s155_s1 + $0x4] sm:$0x3] %v54_v2  ;;  %56 = vst [vmem:[%s155_s1 + $0x14] sm:$0x3] %v54_v2  ;;  %v63_v5 = vld [vmem:[%s154_s0 + $0x5] ss:$0 sm:$0xff] }
   0x5   :  { %58 = vst [vmem:[%s155_s1 + $0x6] sm:$0x3] %v57_v3  ;;  %59 = vst [vmem:[%s155_s1 + $0x16] sm:$0x3] %v57_v3  ;;  %v66_v6 = vld [vmem:[%s154_s0 + $0x6] ss:$0 sm:$0xff] }
   0x6   :  { %61 = vst [vmem:[%s155_s1 + $0x8] sm:$0x3] %v60_v4  ;;  %62 = vst [vmem:[%s155_s1 + $0x18] sm:$0x3] %v60_v4  ;;  %v69_v7 = vld [vmem:[%s154_s0 + $0x7] ss:$0 sm:$0xff] }
   0x7   :  { %64 = vst [vmem:[%s155_s1 + $0xa] sm:$0x3] %v63_v5  ;;  %65 = vst [vmem:[%s155_s1 + $0x1a] sm:$0x3] %v63_v5 }
   0x8   :  { %67 = vst [vmem:[%s155_s1 + $0xc] sm:$0x3] %v66_v6  ;;  %68 = vst [vmem:[%s155_s1 + $0x1c] sm:$0x3] %v66_v6 }
   0x9   :  { %70 = vst [vmem:[%s155_s1 + $0xe] sm:$0x3] %v69_v7  ;;  %71 = vst [vmem:[%s155_s1 + $0x1e] sm:$0x3] %v69_v7 }

// kernel: tile.23
= control target key start
LH: loop header
LB: loop body
LE: loop exit
PB: predicated region body
PF: predicated region fallthrough
CT: control target
= control target key end

     0   :  { %s154_s0 = inlined_call_operand.vmem [shape: f32[8,8], index: 0, kind: input, shape index: {}]   ;;  %s155_s1 = inlined_call_operand.vmem [shape: f32[2,8,4,8], index: 1, kind: output, shape index: {}]  }
   0x1   :  { %v4_v0 = vld [vmem:[%s154_s0] ss:$0 sm:$0xff]  ;;  %v51_v1 = vld [vmem:[%s154_s0 + $0x1] ss:$0 sm:$0xff]  ;;  %v54_v2 = vld [vmem:[%s154_s0 + $0x2] ss:$0 sm:$0xff] }
   0x2   :  { %5 = vst [vmem:[%s155_s1] sm:$0xf] %v4_v0  ;;  %50 = vst [vmem:[%s155_s1 + $0x20] sm:$0xf] %v4_v0  ;;  %v57_v3 = vld [vmem:[%s154_s0 + $0x3] ss:$0 sm:$0xff] }
   0x3   :  { %52 = vst [vmem:[%s155_s1 + $0x4] sm:$0xf] %v51_v1  ;;  %53 = vst [vmem:[%s155_s1 + $0x24] sm:$0xf] %v51_v1  ;;  %v60_v4 = vld [vmem:[%s154_s0 + $0x4] ss:$0 sm:$0xff] }
   0x4   :  { %55 = vst [vmem:[%s155_s1 + $0x8] sm:$0xf] %v54_v2  ;;  %56 = vst [vmem:[%s155_s1 + $0x28] sm:$0xf] %v54_v2  ;;  %v63_v5 = vld [vmem:[%s154_s0 + $0x5] ss:$0 sm:$0xff] }
   0x5   :  { %58 = vst [vmem:[%s155_s1 + $0xc] sm:$0xf] %v57_v3  ;;  %59 = vst [vmem:[%s155_s1 + $0x2c] sm:$0xf] %v57_v3  ;;  %v66_v6 = vld [vmem:[%s154_s0 + $0x6] ss:$0 sm:$0xff] }
   0x6   :  { %61 = vst [vmem:[%s155_s1 + $0x10] sm:$0xf] %v60_v4  ;;  %62 = vst [vmem:[%s155_s1 + $0x30] sm:$0xf] %v60_v4  ;;  %v69_v7 = vld [vmem:[%s154_s0 + $0x7] ss:$0 sm:$0xff] }
   0x7   :  { %64 = vst [vmem:[%s155_s1 + $0x14] sm:$0xf] %v63_v5  ;;  %65 = vst [vmem:[%s155_s1 + $0x34] sm:$0xf] %v63_v5 }
   0x8   :  { %67 = vst [vmem:[%s155_s1 + $0x18] sm:$0xf] %v66_v6  ;;  %68 = vst [vmem:[%s155_s1 + $0x38] sm:$0xf] %v66_v6 }
   0x9   :  { %70 = vst [vmem:[%s155_s1 + $0x1c] sm:$0xf] %v69_v7  ;;  %71 = vst [vmem:[%s155_s1 + $0x3c] sm:$0xf] %v69_v7 }

// kernel: tile.24
= control target key start
LH: loop header
LB: loop body
LE: loop exit
PB: predicated region body
PF: predicated region fallthrough
CT: control target
= control target key end

     0   :  { %vm82_vm0 = vcmask 1047556   ;;  %vm84_vm1 = vcmask 64512   ;;  %s195_s9 = smov 24   ;;  %s196_s14 = smov 8   ;;  %vm103_vm2 = vcmask 261312   ;;  %vm124_vm3 = vcmask 195712   ;;  %s289_s0 = inlined_call_operand.vmem [shape: f32[2,8,4,8], index: 0, kind: input, shape index: {}]   ;;  %s290_s1 = inlined_call_operand.vmem [shape: f32[16,32], index: 1, kind: output, shape index: {}]  }
   0x1   :  { %v180_v0 = vld [vmem:[%s289_s0 + $0x1c] sm:$0xf]  ;;  %v181_v1 = vld [vmem:[%s289_s0 + $0x18] sm:$0xf]  ;;  %v182_v2 = vld [vmem:[%s289_s0 + $0x14] sm:$0xf] }
   0x2   :  { %48 = vst [vmem:[#allocation0 + $0x38] sm:$0xf] %v180_v0  ;;  %53 = vst [vmem:[#allocation0 + $0x30] sm:$0xf] %v181_v1  ;;  %v183_v3 = vld [vmem:[%s289_s0 + $0x10] sm:$0xf] }
   0x3   :  { %58 = vst [vmem:[#allocation0 + $0x28] sm:$0xf] %v182_v2  ;;  %v184_v4 = vld [vmem:[%s289_s0 + $0xc] sm:$0xf]  ;;  %v185_v5 = vld [vmem:[%s289_s0 + $0x8] sm:$0xf] }
   0x4   :  { %63 = vst [vmem:[#allocation0 + $0x20] sm:$0xf] %v183_v3  ;;  %68 = vst [vmem:[#allocation0 + $0x18] sm:$0xf] %v184_v4  ;;  %v186_v6 = vld [vmem:[%s289_s0 + $0x4] sm:$0xf] }
   0x5   :  { %73 = vst [vmem:[#allocation0 + $0x10] sm:$0xf] %v185_v5  ;;  %v78_v7 = vld [vmem:[%s289_s0] sm:$0xf]  ;;  %77 = vst [vmem:[#allocation0 + $0x8] sm:$0xf] %v186_v6 }
   0x6   :  { %79 = vst [vmem:[#allocation0] sm:$0xf] %v78_v7  ;;  %v172_v8 = vld [vmem:[%s289_s0 + $0x3c] sm:$0xf]  ;;  %v173_v9 = vld [vmem:[%s289_s0 + $0x38] sm:$0xf] }
   0x7   :  { %8 = vst [vmem:[#allocation0 + $0x78] sm:$0xf] %v172_v8  ;;  %13 = vst [vmem:[#allocation0 + $0x70] sm:$0xf] %v173_v9  ;;  %v174_v10 = vld [vmem:[%s289_s0 + $0x34] sm:$0xf] }
   0x8   :  { %v175_v11 = vld [vmem:[%s289_s0 + $0x30] sm:$0xf]  ;;  %v176_v12 = vld [vmem:[%s289_s0 + $0x2c] sm:$0xf]  ;;  %18 = vst [vmem:[#allocation0 + $0x68] sm:$0xf] %v174_v10 }
   0x9   :  { %23 = vst [vmem:[#allocation0 + $0x60] sm:$0xf] %v175_v11  ;;  %28 = vst [vmem:[#allocation0 + $0x58] sm:$0xf] %v176_v12  ;;  %v177_v13 = vld [vmem:[%s289_s0 + $0x28] sm:$0xf] }
   0xa   :  { %v178_v14 = vld [vmem:[%s289_s0 + $0x24] sm:$0xf]  ;;  %v179_v15 = vld [vmem:[%s289_s0 + $0x20] sm:$0xf]  ;;  %33 = vst [vmem:[#allocation0 + $0x50] sm:$0xf] %v177_v13 }
   0xb   :  { %38 = vst [vmem:[#allocation0 + $0x48] sm:$0xf] %v178_v14  ;;  %43 = vst [vmem:[#allocation0 + $0x40] sm:$0xf] %v179_v15  ;;  %s194_s0 = smov 16   ;;  %vm145_vm4 = vcmask 130112  }
   0xc   :  { %v119_v16 = vld [vmem:[#allocation0 + $0x2] ss:$8 sm:$0xf0]   ;;  %v98_v17 = vld [vmem:[#allocation0 + $0x3] ss:$8 sm:$0xf0]  }
   0xd   :  { %v117_v18 = vld [vmem:[#allocation0 + $0x2] ss:$8 sm:$0xf]   ;;  %v96_v19 = vld [vmem:[#allocation0 + $0x3] ss:$8 sm:$0xf]  }
   0xe   :  { %v121_v20 = vsel %vm82_vm0, %v119_v16, %v117_v18  ;;  %v100_v21 = vsel %vm82_vm0, %v98_v17, %v96_v19  ;;  %v138_v24 = vld [vmem:[#allocation0 + $0x1] ss:$8 sm:$0xf]   ;;  %v80_v32 = vld [vmem:[#allocation0] ss:$8 sm:$0xf]  }
   0xf   :  { %122 = vrot.lane.b32.xlu1 %v121_v20, %s194_s0  ;;  %101 = vrot.lane.b32.xlu0 %v100_v21, %s195_s9  ;;  %v140_v25 = vld [vmem:[#allocation0 + $0x1] ss:$8 sm:$0xf0]   ;;  %v81_v33 = vld [vmem:[#allocation0] ss:$8 sm:$0xf0]  }
  0x10   :  { %v129_v22 = vld [vmem:[#allocation0 + $0x42] ss:$8 sm:$0xf0]   ;;  %v108_v23 = vld [vmem:[#allocation0 + $0x43] ss:$8 sm:$0xf0]   ;;  %v83_v34 = vsel %vm82_vm0, %v81_v33, %v80_v32  ;;  %v142_v38 = vsel %vm82_vm0, %v140_v25, %v138_v24 }
  0x11   :  { %v150_v31 = vld [vmem:[#allocation0 + $0x41] ss:$8 sm:$0xf0]   ;;  %v89_v36 = vld [vmem:[#allocation0 + $0x40] ss:$8 sm:$0xf0]  }
  0x12   :  { %v127_v26 = vld [vmem:[#allocation0 + $0x42] ss:$8 sm:$0xf]   ;;  %v106_v27 = vld [vmem:[#allocation0 + $0x43] ss:$8 sm:$0xf]  }
  0x13   :  { %v131_v28 = vsel %vm82_vm0, %v129_v22, %v127_v26  ;;  %v110_v29 = vsel %vm82_vm0, %v108_v23, %v106_v27  ;;  %v148_v30 = vld [vmem:[#allocation0 + $0x41] ss:$8 sm:$0xf]   ;;  %v87_v35 = vld [vmem:[#allocation0 + $0x40] ss:$8 sm:$0xf]  }
  0x14   :  { %132 = vrot.lane.b32.xlu1 %v131_v28, %s194_s0  ;;  %111 = vrot.lane.b32.xlu0 %v110_v29, %s195_s9  ;;  %v152_v37 = vsel %vm82_vm0, %v150_v31, %v148_v30  ;;  %85 = vst.msk [vmem:[%s290_s1] sm:$0xff] %vm84_vm1, %v83_v34   ;;  %v91_v39 = vsel %vm82_vm0, %v89_v36, %v87_v35 }
  0x15   :  { %187 = vst.msk [vmem:[%s290_s1 + $0x8] sm:$0xff] %vm84_vm1, %v91_v39  }
  0x18   :  { %153 = vrot.lane.b32.xlu1 %v152_v37, %s196_s14  ;;  %143 = vrot.lane.b32.xlu0 %v142_v38, %s196_s14 }
  0x81   :  { %v123_v40 = vpop.permute.xlu1 %122   ;;  %v102_v41 = vpop.permute.xlu0 %101  }
  0x82   :  { %104 = vst.msk [vmem:[%s290_s1] sm:$0xff] %vm103_vm2, %v102_v41  }
  0x83   :  { %125 = vst.msk [vmem:[%s290_s1] sm:$0xff] %vm124_vm3, %v123_v40  }
  0x86   :  { %v133_v42 = vpop.permute.xlu1 %132   ;;  %v112_v43 = vpop.permute.xlu0 %111  }
  0x87   :  { %188 = vst.msk [vmem:[%s290_s1 + $0x8] sm:$0xff] %vm103_vm2, %v112_v43  }
  0x88   :  { %189 = vst.msk [vmem:[%s290_s1 + $0x8] sm:$0xff] %vm124_vm3, %v133_v42  }
  0x8a   :  { %v154_v44 = vpop.permute.xlu1 %153   ;;  %v144_v45 = vpop.permute.xlu0 %143  }
  0x8b   :  { %190 = vst.msk [vmem:[%s290_s1 + $0x8] sm:$0xff] %vm145_vm4, %v154_v44   ;;  %146 = vst.msk [vmem:[%s290_s1] sm:$0xff] %vm145_vm4, %v144_v45  }

// kernel: deepseek_forward.1
= control target key start
LH: loop header
LB: loop body
LE: loop exit
PB: predicated region body
PF: predicated region fallthrough
CT: control target
= control target key end

     0   :  { %s2993_s0 = inlined_call_operand.vmem [shape: f32[16,32], index: 0, kind: input, shape index: {}]   ;;  %s2994_s1 = inlined_call_operand.vmem [shape: f32[16,32], index: 1, kind: input, shape index: {}]   ;;  %s2995_s2 = inlined_call_operand.vmem [shape: f32[16,32], index: 2, kind: input, shape index: {}]   ;;  %s2996_s3 = inlined_call_operand.vmem [shape: f32[16,16], index: 3, kind: input, shape index: {}]   ;;  %s2997_s4 = inlined_call_operand.vmem [shape: f32[16,16], index: 4, kind: input, shape index: {}]   ;;  %s2998_s5 = inlined_call_operand.vmem [shape: f32[32,32], index: 5, kind: input, shape index: {}]   ;;  %s2999_s6 = inlined_call_operand.vmem [shape: f32[16,16], index: 6, kind: input, shape index: {}]   ;;  %s3000_s7 = inlined_call_operand.vmem [shape: f32[2,1,32], index: 7, kind: input, shape index: {}]   ;;  %s3001_s8 = inlined_call_operand.vmem [shape: f32[2,1,32], index: 8, kind: input, shape index: {}]   ;;  %s3002_s9 = inlined_call_operand.vmem [shape: f32[2,32,64], index: 9, kind: input, shape index: {}]   ;;  %s3003_s10 = inlined_call_operand.vmem [shape: f32[2,32,32], index: 10, kind: input, shape index: {}]   ;;  %s3004_s11 = inlined_call_operand.vmem [shape: f32[2,32,128], index: 11, kind: input, shape index: {}]   ;;  %s3005_s12 = inlined_call_operand.vmem [shape: f32[2,64,32], index: 12, kind: input, shape index: {}]   ;;  %s3006_s13 = inlined_call_operand.vmem [shape: f32[1,32], index: 13, kind: input, shape index: {}]   ;;  %s3007_s14 = inlined_call_operand.hbm [shape: f32[16,32], index: 14, kind: output, shape index: {}]  }
   0x1   :  { %3025 = sst [smem:[#allocation19_spill]] %s2993_s0 }
   0x2   :  { %3026 = sst [smem:[#allocation20_spill]] %s2998_s5 }
   0x3   :  { %3027 = sst [smem:[#allocation21_spill]] %s2999_s6 }
   0x4   :  { %3028 = sst [smem:[#allocation22_spill]] %s3006_s13 }
   0x5   :  { %3029 = sst [smem:[#allocation23_spill]] %s3007_s14 }
   0x6   :  { %19 = vsyncpa [#allocation4], 0 }
   0x7   :  { %21 = vsyncpa [#allocation4 + $0x1], 0  ;;  %s2635_s29 = smov 0   ;;  %s2637_s30 = smov 0  }
   0x8   :  { %s2639_s15 = smov 0   ;;  %s2641_s16 = smov 0  }
   0x9   :  { %s2643_s17 = smov 0   ;;  %s2645_s18 = smov 0  }
   0xa   :  { %s2647_s19 = smov 0   ;;  %s2649_s20 = smov 0  }
   0xb LB: > { %3030 = sst [smem:[#allocation6_spill]] %s2514_s29  ;;  %s2088_s21 = sadd.s32 4294967295, %s2542_s20   ;;  %s2542_s20 = sphi %s2649_s20, %s27_s20   ;;  %s2538_s19 = sphi %s2647_s19, %s3071_s19   ;;  %s2534_s18 = sphi %s2645_s18, %s3070_s18   ;;  %s2530_s17 = sphi %s2643_s17, %s3069_s17   ;;  %s2526_s16 = sphi %s2641_s16, %s3068_s16   ;;  %s2522_s15 = sphi %s2639_s15, %s3067_s15   ;;  %s2518_s30 = sphi %s2637_s30, %s3066_s30   ;;  %s2514_s29 = sphi %s2635_s29, %s3065_s29  }
   0xc   : > { %3031 = sst [smem:[#allocation7_spill]] %s2518_s30  ;;  %s2089_s22 = sadd.s32 4294967294, %s2542_s20  }
   0xd   : > { %3032 = sst [smem:[#allocation8_spill]] %s2522_s15  ;;  %s36_s23 = sadd.s32 1, %s2534_s18 }
   0xe   : > { %3033 = sst [smem:[#allocation9_spill]] %s2526_s16  ;;  %p37_p0 = scmp.ge.s32.totalorder %s36_s23, 2 }
   0xf   : > { %3034 = sst [smem:[#allocation10_spill]] %s2530_s17  ;;  %s39_s24 = sadd.s32 1, %s2538_s19 }
  0x10   : > { %3035 = sst [smem:[#allocation11_spill]] %s2534_s18  ;;  %p405_p1 = scmp.ne.s32.totalorder %s2522_s15, %s2518_s30 }
  0x11   : > { %3036 = sst [smem:[#allocation12_spill]] %s2538_s19  ;;  %p406_p2 = scmp.eq.s32.totalorder %s2088_s21, 3 }
  0x12   : > { %3037 = sst [smem:[#allocation13_spill]] %s2542_s20  ;;  %s3073_s23 = smov (%p37_p0, %s36_s23), 0 }
  0x13   : > { %3038 = sst [smem:[#allocation14_spill]] %s3073_s23  ;;  %s3075_s24 = smov (!%p37_p0, %s39_s24), %s2538_s19 }
  0x14   : > { %p2684_p3 = por %p406_p2, %p405_p1  ;;  %p411_p4 = scmp.ne.s32.totalorder %s2518_s30, %s2514_s29 }
  0x15   : > { %p41_p5 = scmp.ge.s32.totalorder %s3075_s24, 2  ;;  %p412_p6 = scmp.eq.s32.totalorder %s2089_s22, 3 }
  0x16   : > { %s3039_s25 = scalar_select %p2684_p3, 1, 0 }
  0x17   : > { %p2092_p7 = scmp.ge.s32.totalorder %s2542_s20, 1  ;;  %p518_p8 = scmp.lt.s32.totalorder %s2542_s20, 5 }
  0x18   : > { %3040 = sst [smem:[#allocation15_spill]] %s3039_s25  ;;  %s3077_s24 = smov (%p41_p5, %s3075_s24), 0 }
  0x19   : > { %3041 = sst [smem:[#allocation16_spill]] %s3077_s24  ;;  %p2694_p9 = por %p412_p6, %p411_p4 }
  0x1a   : > { %p519_p10 = pnand %p2092_p7, %p518_p8  ;;  %s392_s27 = ssub.s32 %s2538_s19, %s3077_s24 }
  0x1b   : > { %s3042_s26 = scalar_select %p2694_p9, 1, 0 }
  0x1c   : > { %s395_s28 = sadd.s32 1, %s2522_s15  ;;  %p393_p11 = scmp.eq.s32.totalorder %s392_s27, 0 }
  0x1d   : > { %3043 = sst [smem:[#allocation17_spill]] %s3042_s26  ;;  %522 = sbr.rel (%p519_p10) target bundleno = 2974 (0xb9e), region = 76 }
  0x1e   : > { %s2702_s21 = scalar_select %p393_p11, %s2522_s15, %s395_s28  }
  0x1f   : > { %s3011_s22 = sand.u32 (!%p519_p10), 1, %s2518_s30   ;;  %p605_p12 = scmp.lt.s32.totalorder (!%p519_p10), %s2530_s17, 1 }
  0x20   : > { %3044 = sst [smem:[#allocation18_spill]] %s2702_s21  ;;  %s2708_s23 = sshll.u32 (!%p519_p10), %s3011_s22, 3 }
  0x21   : > { %p625_p13 = scmp.lt.s32.totalorder (!%p519_p10), %s2526_s16, 1  ;;  %s3045_s0 = sld [smem:[#allocation19_spill]] (!%p519_p10) }
  0x22   : > { %s3046_s15 = sld [smem:[#allocation9_spill]] (!%p519_p10) }
  0x24   : > { %s606_s18 = scalar_select %p605_p12, %s2530_s17, 1 }
  0x25   : > { %s2713_s24 = scalar_select %p625_p13, %s2526_s16, 1 }
  0x26   : > { %s2715_s27 = sshll.u32 %s606_s18, 3  ;;  %s604_s16 = scalar_lea.vmem [#allocation3], %s2708_s23 }
  0x27   : > { %s608_s22 = scalar_lea.vmem %s3045_s0, %s2715_s27  ;;  %s620_s30 = scalar_lea.vmem %s2996_s3, %s2715_s27 }
  0x28   : > { %s2135_s21 = sshll.u32 %s2713_s24, 5  ;;  %s2138_s6 = sshll.u32 %s2713_s24, 6 }
  0x29   : > { %s635_s20 = scalar_lea.vmem %s3002_s9, %s2135_s21  ;;  %s2752_s18 = scalar_lea.vmem %s3003_s10, %s2135_s21 }
  0x2a   : > { %s2757_s19 = scalar_lea.vmem %s3004_s11, %s2135_s21  ;;  %s2763_s5 = scalar_lea.vmem %s3005_s12, %s2138_s6 }
  0x2b   : > { %p2107_p0 = scmp.ne.s32.totalorder %s3046_s15, 0 }
  0x2c   : > { %v655_v0 = vld [vmem:[%s608_s22] sm:$0xff] (!%p2107_p0)  ;;  %vm656_vm0 = vcmask (!%p2107_p0), 261120  }
  0x2d   : > { %654 = sbr.rel (%p2107_p0) target bundleno = 52 (0x34), region = 80  ;;  %657 = vst.msk [vmem:[#allocation2] sm:$0xff] (!%p2107_p0), %vm656_vm0, %v655_v0 }
  0x34 PF: > { %v2767_v1 = vld [vmem:[#allocation2] sm:$0xff]  ;;  %vm661_vm1 = vcmask 261120   ;;  %v678_v5 = vld [vmem:[%s635_s20 + $0x8] sm:$0xff]  ;;  %v679_v6 = vld [vmem:[%s635_s20 + $0x10] sm:$0xff]  ;;  %v2544_v7 = vmov 0.0|0.0   ;;  %vm2545_vm2 = vmmov 0   ;;  %s3051_s6 = scalar_lea.vmem %s2994_s1, %s2715_s27  ;;  %s3052_s14 = scalar_lea.vmem %s2995_s2, %s2715_s27  ;;  %v926_v52 = vlaneseq }
  0x35   : > { %v660_v2 = vmul.f32 %v2767_v1, %v2767_v1  ;;  %v677_v4 = vld [vmem:[%s635_s20] sm:$0xff]  ;;  %2297 = vmatprep.subr.bf16.mxu0 %v2544_v7  ;;  %v680_v9 = vld [vmem:[%s635_s20 + $0x18] sm:$0xff]  ;;  %v2546_v10 = vmov 0.0   ;;  %s2547_s26 = smov 32   ;;  %s3047_s21 = sld [smem:[#allocation20_spill]]  ;;  %vm846_vm3 = vcmask 130048  }
  0x36   : > { %v2298_v8 = vpack.c.bf16 %v678_v5, %v677_v4  ;;  %2195 = vmatprep.mubr.msk.f32.mxu0 %vm2545_vm2, %v2546_v10  ;;  %2216 = vmatprep.subr.mxu1 %v2546_v10  ;;  %v2301_v11 = vpack.c.bf16 %v680_v9, %v679_v6  ;;  %v836_v12 = vld [vmem:[%s620_s30] sm:$0xff]  ;;  %s3048_s30 = scalar_lea.vmem %s3000_s7, %s2713_s24  ;;  %s3049_s15 = sld [smem:[#allocation21_spill]]  ;;  %vm934_vm4 = vcmask 64512   ;;  %v927_v53 = vshrl.u32 %v926_v52, 7 }
  0x37   : > { %v662_v3 = vsel %vm661_vm1, %v660_v2, 0.0  ;;  %2218 = vmatprep.mubr.msk.f32.mxu1 %vm2545_vm2, %v2546_v10  ;;  %838 = vrot.lane.b32.xlu1 %v836_v12, %s2547_s26  ;;  %v2108_v19 = vld [vmem:[%s3048_s30] ss:$0 sm:$0xff]  ;;  %s2548_s13 = smov 96   ;;  %s3053_s29 = scalar_lea.vmem %s2997_s4, %s2715_s27  ;;  %v929_v54 = vand.u32 127, %v926_v52  ;;  %v1605_v52 = vld [vmem:[%s2752_s18 + $0x18] sm:$0xff] }
  0x38   : > { %663 = vadd.xlane.f32.xlu0 %v662_v3  ;;  %2299 = vmatpush3.bf16.msra.mxu0 %v2298_v8  ;;  %v754_v32 = vld [vmem:[%s3051_s6] sm:$0xff]  ;;  %s2549_s20 = smov 120   ;;  %s2550_s30 = smov 88   ;;  %vm1600_vm6 = vcmask 195584   ;;  %vm1793_vm7 = vcmask 523264  }
  0x39   : > { %2300 = vmatprep.subr.bf16.mxu0 %v2544_v7  ;;  %v833_v33 = vld [vmem:[%s3052_s14] sm:$0xff]  ;;  %s2551_s17 = smov 112   ;;  %s2552_s6 = smov 104   ;;  %vm930_vm5 = vcmp.le.s32.totalorder %v929_v54, %v927_v53 }
  0x3a   : > { %v919_v39 = vld [vmem:[%s3053_s29] sm:$0xff]  ;;  %s2553_s27 = smov 80   ;;  %s2556_s28 = smov 16  }
  0x3b   : > { %v756_v16 = vld [vmem:[%s3047_s21] sm:$0xff]  ;;  %v757_v17 = vld [vmem:[%s3047_s21 + $0x8] sm:$0xff]  ;;  %v758_v23 = vld [vmem:[%s3047_s21 + $0x10] sm:$0xff]  ;;  %s2557_s0 = smov 24   ;;  %s3054_s22 = scalar_lea.vmem %s3001_s8, %s2713_s24 }
  0x3c   : > { %2302 = vmatpush3.bf16.msra.mxu0 %v2301_v11  ;;  %v2304_v21 = vpack.c.bf16 %v757_v17, %v756_v16  ;;  %v759_v24 = vld [vmem:[%s3047_s21 + $0x18] sm:$0xff]  ;;  %s3050_s25 = smov %s3049_s15  ;;  %v842_v26 = vld [vmem:[%s3049_s15] sm:$0xff]  ;;  %s2558_s24 = smov 64  }
  0x3d   : > { %2303 = vmatprep.subr.bf16.mxu0 %v2544_v7  ;;  %v2307_v25 = vpack.c.bf16 %v759_v24, %v758_v23  ;;  %v843_v27 = vld [vmem:[%s3050_s25 + $0x8] sm:$0xff] }
  0x3e   : > { %v2310_v28 = vpack.c.bf16 %v843_v27, %v842_v26 }
  0xa9   : > { %v839_v43 = vpop.permute.xlu1 %838 }
  0xc5   : > { %v664_v13 = vpop.xlane.xlu0 %663 }
  0xc6   : > { %v666_v14 = vmul.f32 0.03125, %v664_v13 }
  0xc8   : > { %v667_v15 = vadd.f32 1e-06, %v666_v14 }
  0xca   : > { %2422 = vrsqrt.f32 %v667_v15 }
  0xd4   : > { %v2423_v18 = vpop.eup %2422 }
  0xd5   : > { %v669_v20 = vmul.f32 %v2423_v18, %v2767_v1 }
  0xd7   : > { %v676_v22 = vmul.f32 %v2108_v19, %v669_v20 }
  0xd9   : > { %2196 = vmatmul.mubr.msk.f32.vlgmr.msra.gmra.mrb[0].mxu0 %vm661_vm1, %v676_v22 }
  0xda   : > { %2305 = vmatpush3.bf16.msra.mxu0 %v2304_v21  ;;  %2206 = vmatprep.mubr.msk.f32.mxu0 %vm2545_vm2, %v2546_v10 }
  0xdb   : > { %2306 = vmatprep.subr.bf16.mxu0 %v2544_v7 }
  0xde   : > { %2308 = vmatpush3.bf16.msra.mxu0 %v2307_v25 }
  0xdf   : > { %2309 = vmatprep.subr.bf16.mxu0 %v2544_v7 }
 0x1ac   : > { %v2815_v29 = vpop.f32.mrb[0].mxu0 }
 0x1ad   : > { %844 = vrot.lane.b32.xlu0 %v2815_v29, %s2548_s13  ;;  %v2197_v30 = vpop.f32.mrb[1].mxu0  ;;  %2207 = vmatmul.mubr.msk.f32.vlgmr.msra.gmra.mrb[2].mxu0 %vm661_vm1, %v2815_v29  ;;  %v755_v35 = vmul.f32 %v754_v32, %v2815_v29  ;;  %v841_v44 = vmul.f32 %v839_v43, %v2815_v29 }
 0x1ae   : > { %2311 = vmatpush3.bf16.msra.mxu0 %v2310_v28  ;;  %2213 = vmatprep.mubr.msk.f32.mxu0 %vm2545_vm2, %v2546_v10 }
 0x1af   : > { %2221 = vmatprep.subr.mxu0 %v2546_v10 }
 0x21f   : > { %v845_v31 = vpop.permute.xlu0 %844 }
 0x220   : > { %2214 = vmatmul.mubr.msk.f32.vlgmr.msra.gmra.mrb[4].mxu0 %vm846_vm3, %v845_v31 }
 0x221   : > { %2223 = vmatprep.mubr.msk.f32.mxu0 %vm2545_vm2, %v2546_v10 }
 0x280   : > { %v829_v34 = vpop.f32.mrb[2].mxu0 }
 0x281   : > { %v834_v36 = vmul.f32 %v833_v33, %v829_v34  ;;  %v2208_v37 = vpop.f32.mrb[3].mxu0 }
 0x283   : > { %v835_v38 = vadd.f32 %v834_v36, %v755_v35 }
 0x2f3   : > { %v915_v40 = vpop.f32.mrb[4].mxu0 }
 0x2f4   : > { %v920_v41 = vmul.f32 %v919_v39, %v915_v40  ;;  %v2215_v42 = vpop.f32.mrb[5].mxu0 }
 0x2f6   : > { %922 = vrot.lane.b32.xlu1 %v920_v41, %s2547_s26  ;;  %s2554_s26 = smov 72  }
 0x368   : > { %v923_v45 = vpop.permute.xlu1 %922 }
 0x369   : > { %v925_v46 = vadd.f32 %v923_v45, %v841_v44 }
 0x36b   : > { %932 = vrot.lane.b32.xlu1 %v925_v46, %s2548_s13  ;;  %s2555_s13 = smov 8  }
 0x36f   : > { %1099 = vrot.lane.b32.xlu1 %v835_v38, %s2549_s20 }
 0x373   : > { %1261 = vrot.lane.b32.xlu1 %v925_v46, %s2550_s30 }
 0x377   : > { %1259 = vrot.lane.b32.xlu1 %v835_v38, %s2551_s17 }
 0x37b   : > { %1426 = vrot.lane.b32.xlu1 %v835_v38, %s2552_s6 }
 0x3dd   : > { %v933_v47 = vpop.permute.xlu1 %932 }
 0x3de   : > { %2217 = vmatpush3.xpose.msk.msra.mxu1 %vm934_vm4, %v933_v47 }
 0x3df   : > { %2226 = vmatprep.subr.mxu1 %v2546_v10 }
 0x3e1   : > { %2219 = vmatmul.mubr.msk.f32.vlgmr.msra.gmra.mrb[0].mxu1 %vm934_vm4, %v835_v38  ;;  %v1100_v48 = vpop.permute.xlu1 %1099 }
 0x3e2   : > { %2227 = vmatpush3.xpose.msk.msra.mxu1 %vm934_vm4, %v933_v47  ;;  %2228 = vmatprep.mubr.msk.f32.mxu1 %vm2545_vm2, %v2546_v10 }
 0x3e3   : > { %2236 = vmatprep.subr.mxu1 %v2546_v10 }
 0x3e5   : > { %2229 = vmatmul.mubr.msk.f32.vlgmr.msra.gmra.mrb[2].mxu1 %vm934_vm4, %v1100_v48  ;;  %v1262_v49 = vpop.permute.xlu1 %1261  ;;  %v1602_v48 = vld [vmem:[%s2752_s18] sm:$0xff] }
 0x3e6   : > { %2237 = vmatpush3.xpose.msk.msra.mxu1 %vm934_vm4, %v1262_v49  ;;  %2238 = vmatprep.mubr.msk.f32.mxu1 %vm2545_vm2, %v2546_v10 }
 0x3e7   : > { %2246 = vmatprep.subr.mxu1 %v2546_v10 }
 0x3e9   : > { %v1260_v50 = vpop.permute.xlu1 %1259 }
 0x3ea   : > { %2239 = vmatmul.mubr.msk.f32.vlgmr.msra.gmra.mrb[4].mxu1 %vm934_vm4, %v1260_v50 }
 0x3eb   : > { %2247 = vmatpush3.xpose.msk.msra.mxu1 %vm934_vm4, %v1262_v49  ;;  %2248 = vmatprep.mubr.msk.f32.mxu1 %vm2545_vm2, %v2546_v10  ;;  %v1603_v49 = vld [vmem:[%s2752_s18 + $0x8] sm:$0xff] }
 0x3ec   : > { %2312 = vmatprep.subr.bf16.mxu1 %v2544_v7  ;;  %v2313_v50 = vpack.c.bf16 %v1603_v49, %v1602_v48 }
 0x3ed   : > { %v1427_v51 = vpop.permute.xlu1 %1426 }
 0x3ee   : > { %2249 = vmatmul.mubr.msk.f32.vlgmr.msra.gmra.mrb[6].mxu1 %vm934_vm4, %v1427_v51  ;;  %v1604_v51 = vld [vmem:[%s2752_s18 + $0x10] sm:$0xff] }
 0x3ef   : > { %2264 = vmatprep.mubr.msk.f32.mxu1 %vm2545_vm2, %v2546_v10  ;;  %2314 = vmatpush3.bf16.msra.mxu1 %v2313_v50  ;;  %v2316_v53 = vpack.c.bf16 %v1605_v52, %v1604_v51 }
 0x3f0   : > { %2315 = vmatprep.subr.bf16.mxu1 %v2544_v7 }
 0x3f3   : > { %2317 = vmatpush3.bf16.msra.mxu1 %v2316_v53 }
 0x3f4   : > { %2324 = vmatprep.subr.bf16.mxu1 %v2544_v7 }
 0x4b4   : > { %v1006_v55 = vpop.f32.mrb[0].mxu1 }
 0x4b5   : > { %v1010_v56 = vmul.f32 0.35355338, %v1006_v55  ;;  %v2220_v57 = vpop.f32.mrb[1].mxu1 }
 0x4b7   : > { %v1011_v58 = vsel %vm930_vm5, %v1010_v56, -1e+30 }
 0x4b8   : > { %v1169_v59 = vpop.f32.mrb[2].mxu1  ;;  %v1012_v60 = vsel %vm934_vm4, %v1011_v58, -inf }
 0x4b9   : > { %v1173_v61 = vmul.f32 0.35355338, %v1169_v59  ;;  %1013 = vmax.xlane.f32.xlu0 %v1012_v60  ;;  %v2230_v62 = vpop.f32.mrb[3].mxu1 }
 0x4bb   : > { %v1174_v63 = vsel %vm930_vm5, %v1173_v61, -1e+30 }
 0x4bc   : > { %v1175_v0 = vsel %vm934_vm4, %v1174_v63, -inf }
 0x4bd   : > { %1176 = vmax.xlane.f32.xlu1 %v1175_v0  ;;  %v1333_v2 = vpop.f32.mrb[4].mxu1 }
 0x4be   : > { %v1337_v3 = vmul.f32 0.35355338, %v1333_v2  ;;  %v2240_v4 = vpop.f32.mrb[5].mxu1 }
 0x4c0   : > { %v1338_v5 = vsel %vm930_vm5, %v1337_v3, -1e+30 }
 0x4c1   : > { %v1496_v6 = vpop.f32.mrb[6].mxu1  ;;  %v1339_v8 = vsel %vm934_vm4, %v1338_v5, -inf }
 0x4c2   : > { %v1500_v9 = vmul.f32 0.35355338, %v1496_v6  ;;  %1340 = vmax.xlane.f32.xlu0 %v1339_v8  ;;  %v2250_v11 = vpop.f32.mrb[7].mxu1 }
 0x4c4   : > { %v1501_v12 = vsel %vm930_vm5, %v1500_v9, -1e+30 }
 0x4c5   : > { %v1502_v13 = vsel %vm934_vm4, %v1501_v12, -inf }
 0x4c6   : > { %1503 = vmax.xlane.f32.xlu0 %v1502_v13  ;;  %v1697_v13 = vld [vmem:[%s2757_s19 + $0x8] sm:$0xff] }
 0x546   : > { %v1014_v14 = vpop.xlane.xlu0 %1013 }
 0x547   : > { %v1015_v15 = vsub.f32 %v1011_v58, %v1014_v14 }
 0x549   : > { %v1016_v16 = vmul.f32 1.442695, %v1015_v15  ;;  %v1698_v15 = vld [vmem:[%s2757_s19 + $0x10] sm:$0xff] }
 0x54a   : > { %v1177_v17 = vpop.xlane.xlu1 %1176 }
 0x54b   : > { %2424 = vpow2.f32 %v1016_v16  ;;  %v1178_v18 = vsub.f32 %v1174_v63, %v1177_v17 }
 0x54d   : > { %v1179_v19 = vmul.f32 1.442695, %v1178_v18 }
 0x54f   : > { %2426 = vpow2.f32 %v1179_v19  ;;  %v1341_v20 = vpop.xlane.xlu0 %1340 }
 0x550   : > { %v1342_v21 = vsub.f32 %v1338_v5, %v1341_v20  ;;  %v2125_v20 = vld [vmem:[%s3054_s22] ss:$0 sm:$0xff] }
 0x552   : > { %v1343_v22 = vmul.f32 1.442695, %v1342_v21 }
 0x553   : > { %v1504_v23 = vpop.xlane.xlu0 %1503 }
 0x554   : > { %2428 = vpow2.f32 %v1343_v22  ;;  %v1505_v24 = vsub.f32 %v1501_v12, %v1504_v23  ;;  %v1696_v12 = vld [vmem:[%s2757_s19] sm:$0xff] }
 0x555   : > { %v2425_v25 = vpop.eup %2424  ;;  %v2319_v14 = vpack.c.bf16 %v1697_v13, %v1696_v12  ;;  %v1785_v23 = vld [vmem:[%s2763_s5] sm:$0xff] }
 0x556   : > { %v1506_v26 = vmul.f32 1.442695, %v1505_v24  ;;  %v1018_v27 = vsel %vm934_vm4, %v2425_v25, 0.0  ;;  %v1786_v24 = vld [vmem:[%s2763_s5 + $0x8] sm:$0xff] }
 0x557   : > { %1019 = vadd.xlane.f32.xlu1 %v1018_v27  ;;  %v1788_v27 = vld [vmem:[%s2763_s5 + $0x18] sm:$0xff] }
 0x558   : > { %2430 = vpow2.f32 %v1506_v26  ;;  %v2325_v26 = vpack.c.bf16 %v1786_v24, %v1785_v23 }
 0x559   : > { %v2427_v28 = vpop.eup %2426 }
 0x55a   : > { %v1181_v30 = vsel %vm934_vm4, %v2427_v28, 0.0 }
 0x55b   : > { %1182 = vadd.xlane.f32.xlu0 %v1181_v30  ;;  %v1789_v30 = vld [vmem:[%s2763_s5 + $0x20] sm:$0xff] }
 0x55e   : > { %v2429_v31 = vpop.eup %2428 }
 0x55f   : > { %v1345_v32 = vsel %vm934_vm4, %v2429_v31, 0.0 }
 0x560   : > { %1346 = vadd.xlane.f32.xlu1 %v1345_v32 }
 0x562   : > { %v2431_v33 = vpop.eup %2430 }
 0x563   : > { %v1508_v34 = vsel %vm934_vm4, %v2431_v33, 0.0 }
 0x564   : > { %1509 = vadd.xlane.f32.xlu0 %v1508_v34  ;;  %v1792_v34 = vld [vmem:[%s2763_s5 + $0x38] sm:$0xff] }
 0x571   : > { %1023 = vrot.lane.b32.xlu1 %v2815_v29, %s2553_s27 }
 0x57a   : > { %1350 = vrot.lane.b32.xlu0 %v2815_v29, %s2554_s26 }
 0x5e4   : > { %v1020_v35 = vpop.xlane.xlu1 %1019 }
 0x5e5   : > { %2432 = vrcp.f32 %v1020_v35 }
 0x5e8   : > { %v1183_v36 = vpop.xlane.xlu0 %1182 }
 0x5e9   : > { %2434 = vrcp.f32 %v1183_v36 }
 0x5ed   : > { %v1347_v37 = vpop.xlane.xlu1 %1346 }
 0x5ee   : > { %2436 = vrcp.f32 %v1347_v37 }
 0x5ef   : > { %v2433_v38 = vpop.eup %2432 }
 0x5f0   : > { %v1022_v39 = vmul.f32 %v2433_v38, %v2425_v25  ;;  %v1787_v25 = vld [vmem:[%s2763_s5 + $0x10] sm:$0xff] }
 0x5f1   : > { %v1510_v40 = vpop.xlane.xlu0 %1509  ;;  %v1024_v41 = vpop.permute.xlu1 %1023 }
 0x5f2   : > { %2438 = vrcp.f32 %v1510_v40  ;;  %2222 = vmatpush3.msra.mxu0 %v1024_v41 }
 0x5f3   : > { %v2435_v42 = vpop.eup %2434  ;;  %2224 = vmatmul.mubr.msk.f32.vlgmr.msra.gmra.mrb[6].mxu0 %vm934_vm4, %v1022_v39  ;;  %2231 = vmatprep.subr.mxu0 %v2546_v10 }
 0x5f4   : > { %v1185_v43 = vmul.f32 %v2435_v42, %v2427_v28  ;;  %2232 = vmatpush3.msra.mxu0 %v1024_v41  ;;  %2233 = vmatprep.mubr.msk.f32.mxu0 %vm2545_vm2, %v2546_v10  ;;  %v2328_v28 = vpack.c.bf16 %v1788_v27, %v1787_v25 }
 0x5f5   : > { %v1351_v29 = vpop.permute.xlu0 %1350  ;;  %2241 = vmatprep.subr.mxu0 %v2546_v10 }
 0x5f7   : > { %2234 = vmatmul.mubr.msk.f32.vlgmr.msra.gmra.mrb[8].mxu0 %vm934_vm4, %v1185_v43 }
 0x5f8   : > { %v2437_v44 = vpop.eup %2436  ;;  %2242 = vmatpush3.msra.mxu0 %v1351_v29  ;;  %2243 = vmatprep.mubr.msk.f32.mxu0 %vm2545_vm2, %v2546_v10 }
 0x5f9   : > { %v1349_v45 = vmul.f32 %v2437_v44, %v2429_v31  ;;  %2251 = vmatprep.subr.mxu0 %v2546_v10  ;;  %v1790_v31 = vld [vmem:[%s2763_s5 + $0x28] sm:$0xff] }
 0x5fa   : > { %v2331_v32 = vpack.c.bf16 %v1790_v31, %v1789_v30 }
 0x5fb   : > { %2244 = vmatmul.mubr.msk.f32.vlgmr.msra.gmra.mrb[10].mxu0 %vm934_vm4, %v1349_v45 }
 0x5fc   : > { %v2439_v46 = vpop.eup %2438  ;;  %2252 = vmatpush3.msra.mxu0 %v1351_v29  ;;  %2253 = vmatprep.mubr.msk.f32.mxu0 %vm2545_vm2, %v2546_v10 }
 0x5fd   : > { %v1512_v47 = vmul.f32 %v2439_v46, %v2431_v33  ;;  %2318 = vmatprep.subr.bf16.mxu0 %v2544_v7  ;;  %v1791_v33 = vld [vmem:[%s2763_s5 + $0x30] sm:$0xff] }
 0x5fe   : > { %v2334_v35 = vpack.c.bf16 %v1792_v34, %v1791_v33 }
 0x5ff   : > { %2254 = vmatmul.mubr.msk.f32.vlgmr.msra.gmra.mrb[12].mxu0 %vm934_vm4, %v1512_v47 }
 0x600   : > { %2275 = vmatprep.mubr.msk.f32.mxu0 %vm2545_vm2, %v2546_v10  ;;  %2320 = vmatpush3.bf16.msra.mxu0 %v2319_v14 }
 0x601   : > { %2321 = vmatprep.subr.bf16.mxu0 %v2544_v7 }
 0x6c6   : > { %v1095_v54 = vpop.f32.mrb[6].mxu0 }
 0x6c7   : > { %v2225_v55 = vpop.f32.mrb[7].mxu0 }
 0x6ca   : > { %v1255_v56 = vpop.f32.mrb[8].mxu0 }
 0x6cb   : > { %1587 = vrot.lane.b32.xlu1 %v1255_v56, %s2555_s13  ;;  %v2235_v57 = vpop.f32.mrb[9].mxu0 }
 0x6ce   : > { %v1422_v58 = vpop.f32.mrb[10].mxu0 }
 0x6cf   : > { %1591 = vrot.lane.b32.xlu1 %v1422_v58, %s2556_s28  ;;  %v2245_v59 = vpop.f32.mrb[11].mxu0 }
 0x6d2   : > { %v1582_v60 = vpop.f32.mrb[12].mxu0 }
 0x6d3   : > { %1595 = vrot.lane.b32.xlu0 %v1582_v60, %s2557_s0  ;;  %v2255_v61 = vpop.f32.mrb[13].mxu0 }
 0x73d   : > { %v1588_v62 = vpop.permute.xlu1 %1587 }
 0x73e   : > { %v1598_v0 = vsel %vm934_vm4, %v1095_v54, %v1588_v62 }
 0x741   : > { %v1592_v63 = vpop.permute.xlu1 %1591 }
 0x742   : > { %v1599_v2 = vsel %vm846_vm3, %v1598_v0, %v1592_v63 }
 0x745   : > { %v1596_v3 = vpop.permute.xlu0 %1595 }
 0x746   : > { %v1601_v4 = vsel %vm1600_vm6, %v1599_v2, %v1596_v3 }
 0x747   : > { %2265 = vmatmul.mubr.msk.f32.vlgmr.msra.gmra.mrb[8].mxu1 %vm661_vm1, %v1601_v4 }
 0x748   : > { %2294 = vmatprep.mubr.msk.f32.mxu1 %vm2545_vm2, %v2546_v10  ;;  %v1699_v10 = vld [vmem:[%s2757_s19 + $0x18] sm:$0xff]  ;;  %2326 = vmatpush3.bf16.msra.mxu1 %v2325_v26  ;;  %s3055_s19 = sld [smem:[#allocation9_spill]] }
 0x749   : > { %v2322_v16 = vpack.c.bf16 %v1699_v10, %v1698_v15  ;;  %2327 = vmatprep.subr.bf16.mxu1 %v2544_v7 }
 0x74b   : > { %2323 = vmatpush3.bf16.msra.mxu0 %v2322_v16 }
 0x74c   : > { %2329 = vmatpush3.bf16.msra.mxu1 %v2328_v28 }
 0x74d   : > { %2330 = vmatprep.subr.bf16.mxu1 %v2544_v7 }
 0x74e   : > { %p2129_p1 = scmp.ne.s32.totalorder %s3055_s19, 1 }
 0x74f   : > { %s3056_s29 = sld [smem:[#allocation22_spill]] (!%p2129_p1) }
 0x750   : > { %2332 = vmatpush3.bf16.msra.mxu1 %v2331_v32 }
 0x751   : > { %2333 = vmatprep.subr.bf16.mxu1 %v2544_v7 }
 0x754   : > { %2335 = vmatpush3.bf16.msra.mxu1 %v2334_v35 }
 0x755   : > { %v2130_v52 = vld [vmem:[%s3056_s29] ss:$0 sm:$0xff] (!%p2129_p1) }
 0x81a   : > { %v1675_v5 = vpop.f32.mrb[8].mxu1 }
 0x81b   : > { %v1679_v6 = vadd.f32 %v1675_v5, %v2767_v1  ;;  %v2266_v8 = vpop.f32.mrb[9].mxu1 }
 0x81d   : > { %v1681_v9 = vmul.f32 %v1679_v6, %v1679_v6 }
 0x81f   : > { %v1682_v11 = vsel %vm661_vm1, %v1681_v9, 0.0 }
 0x820   : > { %1683 = vadd.xlane.f32.xlu1 %v1682_v11 }
 0x8ad   : > { %v1684_v1 = vpop.xlane.xlu1 %1683 }
 0x8ae   : > { %v1685_v17 = vmul.f32 0.03125, %v1684_v1 }
 0x8b0   : > { %v1686_v18 = vadd.f32 1e-06, %v1685_v17 }
 0x8b2   : > { %2440 = vrsqrt.f32 %v1686_v18 }
 0x8bc   : > { %v2441_v19 = vpop.eup %2440 }
 0x8bd   : > { %v1688_v21 = vmul.f32 %v2441_v19, %v1679_v6 }
 0x8bf   : > { %v1695_v22 = vmul.f32 %v2125_v20, %v1688_v21 }
 0x8c1   : > { %2276 = vmatmul.mubr.msk.f32.vlgmr.msra.gmra.mrb[14].mxu0 %vm661_vm1, %v1695_v22 }
 0x994   : > { %v1769_v36 = vpop.f32.mrb[14].mxu0 }
 0x995   : > { %1781 = vrot.lane.b32.xlu0 %v1769_v36, %s2558_s24  ;;  %v2277_v37 = vpop.f32.mrb[15].mxu0  ;;  %v2127_v38 = vmul.f32 -1.442695, %v1769_v36 }
 0x997   : > { %2442 = vpow2.f32 %v2127_v38 }
 0x9a1   : > { %v2443_v39 = vpop.eup %2442 }
 0x9a2   : > { %v1776_v40 = vadd.f32 1.0, %v2443_v39 }
 0x9a4   : > { %2444 = vrcp.f32 %v1776_v40 }
 0x9ae   : > { %v2445_v41 = vpop.eup %2444 }
 0x9af   : > { %v1779_v42 = vmul.f32 %v2445_v41, %v1769_v36 }
 0xa07   : > { %v1782_v43 = vpop.permute.xlu0 %1781 }
 0xa08   : > { %v1784_v29 = vmul.f32 %v1782_v43, %v1779_v42 }
 0xa0a   : > { %2295 = vmatmul.mubr.msk.f32.vlgmr.msra.gmra.mrb[10].mxu1 %vm1793_vm7, %v1784_v29 }
 0xada   : > { %1872 = sbr.rel (%p2129_p1) target bundleno = 2949 (0xb85), region = 84 }
 0xadd   : > { %v1863_v44 = vpop.f32.mrb[10].mxu1 }
 0xade   : > { %v1867_v45 = vadd.f32 %v1863_v44, %v1679_v6  ;;  %v2296_v46 = vpop.f32.mrb[11].mxu1 }
 0xae0   : > { %1868 = vst.msk [vmem:[#allocation2] sm:$0xff] %vm661_vm1, %v1867_v45  ;;  %v1874_v7 = vmul.f32 (!%p2129_p1), %v1867_v45, %v1867_v45 }
 0xae2   : > { %v1875_v47 = vsel %vm661_vm1, %v1874_v7, 0.0 }
 0xae3   : > { %1876 = vadd.xlane.f32.xlu0 %v1875_v47 }
 0xb70   : > { %v1877_v48 = vpop.xlane.xlu0 %1876 }
 0xb71   : > { %v1878_v49 = vmul.f32 0.03125, %v1877_v48 }
 0xb73   : > { %v1879_v50 = vadd.f32 1e-06, %v1878_v49 }
 0xb75   : > { %2446 = vrsqrt.f32 %v1879_v50 }
 0xb7f   : > { %v2447_v51 = vpop.eup %2446 }
 0xb80   : > { %v1881_v53 = vmul.f32 %v2447_v51, %v1867_v45 }
 0xb82   : > { %v1888_v54 = vmul.f32 %v2130_v52, %v1881_v53 }
 0xb84   : > { %1889 = vst.msk [vmem:[%s604_s16] sm:$0xff] %vm661_vm1, %v1888_v54 }
 0xb85 PF: > { %s3057_s20 = sld [smem:[#allocation10_spill]]  ;;  %s3058_s30 = sld [smem:[#allocation7_spill]] }
 0xb86   : > { %s3060_s13 = sld [smem:[#allocation23_spill]]  ;;  %s1904_s0 = sshll.u32 %s604_s16, 4  ;;  %s1905_s0 = int_to_ptr.vmem [resolvable:$true] %s1904_s0 }
 0xb87   : > { %s2448_s22 = scalar_lea.vmem %s1905_s0, 128  ;;  %s2559_s24 = smov [#allocation3]  }
 0xb88   : > { %p2449_p2 = scmp.ne.s32.totalorder %s1905_s0, %s2448_s22  ;;  %s2452_s19 = sshll.u32 %s2559_s24, 4  ;;  %s2453_s19 = int_to_ptr.vmem [resolvable:$false] %s2452_s19 }
 0xb89   : > { %s2454_s5 = scalar_lea.vmem %s2453_s19, 256  ;;  %p2455_p6 = scmp.lt.s32.totalorder %s1905_s0, %s2453_s19 }
 0xb8a   : > { %p2450_p4 = pnand %p2449_p2, %p2684_p3  ;;  %p2456_p7 = scmp.lt.s32.totalorder %s2454_s5, %s2448_s22 }
 0xb8b   : > { %s2132_s6 = sshll.u32 %s3057_s20, 7  ;;  %s3061_s18 = sand.u32 1, %s3058_s30  }
 0xb8c   : > { %s2942_s28 = scalar_lea.hbm %s3060_s13, %s2132_s6  ;;  %s1891_s14 = scalar_lea.sflag [#allocation4], %s3061_s18 }
 0xb8d   : > { %p2451_p5 = pneg %p2450_p4  ;;  %p2457_p8 = por %p2456_p7, %p2455_p6 }
 0xb8f   : > { %p2458_p10 = pnand %p2457_p8, %p2451_p5 }
 0xb91   : > { %2461 = shalt.err (!%p2458_p10)
}
 0xb92   : > { %s2462_s23 = scalar_lea.hbm %s2942_s28, 128  ;;  %s2466_s29 = scalar_lea.hbm %s3060_s13, 256 }
 0xb93   : > { %p2463_p11 = scmp.ne.s32.totalorder %s2942_s28, %s2462_s23  ;;  %p2467_p0 = scmp.lt.u32.totalorder %s2942_s28, %s3060_s13 }
 0xb94   : > { %p2468_p1 = scmp.lt.u32.totalorder %s2466_s29, %s2462_s23  ;;  %p2470_p4 = scmp.lt.u32.totalorder %s2462_s23, %s2942_s28 }
 0xb95   : > { %p2464_p12 = pnand %p2463_p11, %p2684_p3 }
 0xb96   : > { %p2469_p2 = por %p2468_p1, %p2467_p0 }
 0xb97   : > { %p2465_p13 = pneg %p2464_p12 }
 0xb98   : > { %p2471_p5 = por %p2470_p4, %p2469_p2 }
 0xb9a   : > { %p2472_p6 = pnand %p2471_p5, %p2465_p13 }
 0xb9c   : > { %2475 = shalt.err (!%p2472_p6)
}
 0xb9d   : > { %2336 = dma.vmem_to_hbm [thread:$0]  (%p2684_p3), %s1905_s0, 128, %s2942_s28, %s1891_s14  }
 0xb9e PF: > { %s3062_s6 = sld [smem:[#allocation13_spill]]  ;;  %s3063_s27 = sld [smem:[#allocation6_spill]] }
 0xba4   : > { %p2342_p7 = scmp.ge.s32.totalorder %s3062_s6, 2  ;;  %s1916_s18 = sand.u32 1, %s3063_s27  }
 0xba5   : > { %s1917_s22 = scalar_lea.sflag [#allocation4], %s1916_s18 }
 0xba6   : > { %p2339_p8 = pnand %p2342_p7, %p2694_p9 }
 0xba8   : > { %2509 = dma.done.wait (!%p2339_p8), %s1917_s22, 128  }
 0xba9   : > { %2511 = vsyncadd (!%p2339_p8), %s1917_s22, 4294967168  ;;  %s27_s20 = sadd.s32 1, %s3062_s6   ;;  %s3065_s29 = sld [smem:[#allocation7_spill]] }
 0xbaa   : > { %p24_p10 = scmp.ge.s32.totalorder %s27_s20, 6   ;;  %s3066_s30 = sld [smem:[#allocation8_spill]] }
 0xbab   : > { %s3067_s15 = sld [smem:[#allocation18_spill]]  ;;  %s3068_s16 = sld [smem:[#allocation11_spill]] }
 0xbac   : > { %s3069_s17 = sld [smem:[#allocation12_spill]]  ;;  %s3070_s18 = sld [smem:[#allocation14_spill]] }
 0xbad   : > { %s3071_s19 = sld [smem:[#allocation16_spill]]  ;;  %26 = sbr.rel (!%p24_p10) target bundleno = 11 (0xb), region = 149 }
 0xbb4   :  { %1922 = vsyncpa [#allocation4], 1 }
 0xbb5   :  { %1924 = vsyncpa [#allocation4 + $0x1], 1 }

</bundles_post_ra>
